<compile_context>
chip_gen: v7x
topology: tpu7x:2x2x1
jax: 0.10.0
libtpu: 0.0.40
codegen_flags: <defaults>
</compile_context>

<pallas_src>
import functools

import jax
import jax.numpy as jnp
from jax.experimental import pallas as pl
from jax.experimental.pallas import tpu as pltpu

NUM_HEADS = 5
PT = (0.0, 0.2, 0.4, 0.6, 0.8, 1.0)


def _apply_act(name, x):
    if name == 'relu':
        return jnp.maximum(x, 0.0)
    if name == 'tanh':
        return jnp.tanh(x)
    if name == 'sigmoid':
        return jax.nn.sigmoid(x)
    return x  # 'id' / anything else -> no activation (matches self.act = None)


def _round_up(v, m):
    return (v + m - 1) // m * m


def _choose_tile(n):
    """Lane-dense tile along N: multiple of 128, sized per the perf playbook."""
    n128 = _round_up(max(n, 1), 128)
    if n128 <= 1024:
        return n128                              # small N: one tile, no padding waste
    # Large N: at least 2 grid steps (v7x megacore), tiles within [512, 2048].
    half = _round_up((n128 + 1) // 2, 128)
    return int(max(512, min(2048, half)))


# ---------------------------------------------------------------------------
# Fused Pallas kernel: all layers + masked head selection, transposed layout.
#   x_ref  : (1+F, TN)   rows = [t | features], lanes = batch
#   out_ref: (outd, TN)  lane-dense output tile
# ---------------------------------------------------------------------------
def _fused_multihead_kernel(*refs, plan, pt, outd, num_heads):
    x_ref = refs[0]
    out_ref = refs[-1]
    prefs = refs[1:-1]

    x = x_ref[...]                        # (1+F, TN)
    t = x[0:1, :].astype(jnp.float32)     # (1, TN) treatment row

    h = x                                 # layer 0 consumes [t | features] directly
    idx = 0
    for li, (act, istreat, isbias) in enumerate(plan):
        w = prefs[idx][...]; idx += 1     # (out_width, in_width)
        o = jnp.dot(w, h, preferred_element_type=jnp.float32)   # (out_width, TN)
        if li > 0 and istreat:
            tw = prefs[idx][...]; idx += 1                       # (out_width, 1)
            o = o + tw.astype(jnp.float32) * t
        if isbias:
            b = prefs[idx][...]; idx += 1                        # (out_width, 1)
            o = o + b.astype(jnp.float32)
        h = _apply_act(act, o)

    # h: (5*outd, TN) — per-head last-layer outputs packed along sublanes.
    # Masked selection: exactly one bin per row (last bin closed at 1.0).
    acc = jnp.zeros((outd, t.shape[1]), jnp.float32)
    for hd in range(num_heads):
        lo = jnp.float32(pt[hd])
        hi = jnp.float32(pt[hd + 1])
        if hd < num_heads - 1:
            m = (t >= lo) & (t < hi)
        else:
            m = (t >= lo) & (t <= hi)
        acc = acc + m.astype(jnp.float32) * h[hd * outd:(hd + 1) * outd, :]
    out_ref[...] = acc


# ---------------------------------------------------------------------------
# pallas_call wrapper: one call, lane-dense row tiling along N
# ---------------------------------------------------------------------------
def multi_head_forward(packed, plan, x, outd, tile_n=None,
                       compute_dtype=jnp.float32):
    n, d = x.shape
    if tile_n is None:
        tn = _choose_tile(n)
    else:
        tn = _round_up(max(int(tile_n), 128), 128)   # keep lane density
    n_pad = _round_up(n, tn)

    xt = x.T.astype(compute_dtype)                   # (1+F, N)
    if n_pad != n:
        # pad lanes; pad rows have t=0 -> head 0 output, discarded by the slice
        xt = jnp.pad(xt, ((0, 0), (0, n_pad - n)))
    packed = [p.astype(compute_dtype) for p in packed]

    kernel = functools.partial(_fused_multihead_kernel, plan=plan, pt=PT,
                               outd=outd, num_heads=NUM_HEADS)

    in_specs = [pl.BlockSpec((d, tn), lambda i: (0, i))]
    # Small packed weights: full-array block, constant index -> DMA'd once,
    # VMEM-resident across all row tiles.
    in_specs += [pl.BlockSpec(arr.shape, lambda i: (0, 0)) for arr in packed]

    out_t = pl.pallas_call(
        kernel,
        out_shape=jax.ShapeDtypeStruct((outd, n_pad), jnp.float32),
        grid=(pl.cdiv(n_pad, tn),),
        in_specs=in_specs,
        out_specs=pl.BlockSpec((outd, tn), lambda i: (0, i)),
        compiler_params=pltpu.CompilerParams(
            dimension_semantics=("parallel",),
            # Live bytes per lane (row of the batch) are ~2 KiB at these widths,
            # so even tn=2048 with double-buffered streams is far below the
            # 64 MiB v7x / 128 MiB v5e-v6e VMEM; 32 MiB only raises v5e's default.
            vmem_limit_bytes=32 * 1024 * 1024,
        ),
    )(xt, *packed)
    return out_t.T[:n]


# ---------------------------------------------------------------------------
# Parameter construction + head-packing (transposed / lane-dense form)
# ---------------------------------------------------------------------------
def init_params(key, cfg, isenhance):
    """Per-head raw params, same distribution as torch.rand -> U[0, 1)."""
    raw = []
    for li, (ind, outd, isbias, act) in enumerate(cfg):
        istreat = 1 if (li == 0 or isenhance) else 0
        Ws, TWs, Bs = [], [], []
        for _ in range(NUM_HEADS):                 # independent params per head
            key, k1, k2, k3 = jax.random.split(key, 4)
            Ws.append(jax.random.uniform(k1, (ind, outd), jnp.float32))
            TWs.append(jax.random.uniform(k2, (1, outd), jnp.float32)
                       if istreat else jnp.zeros((1, outd), jnp.float32))
            Bs.append(jax.random.uniform(k3, (outd,), jnp.float32)
                      if isbias else jnp.zeros((outd,), jnp.float32))
        raw.append(dict(W=jnp.stack(Ws),           # (5, ind, outd)
                        TW=jnp.stack(TWs),         # (5, 1, outd)
                        B=jnp.stack(Bs),           # (5, outd)
                        act=act, istreat=istreat, isbias=isbias,
                        ind=ind, outd=outd))
    return raw


def pack_params(raw):
    """Pack per-head params into transposed lane-packed / block-diag matrices.

    Kernel computes  o = W_packed @ h  with h laid out (in_width, TN), so every
    packed weight is stored (out_width, in_width).
    """
    packed = []
    plan = []
    for li, p in enumerate(raw):
        ind, outd = p['ind'], p['outd']
        W, TW, B = p['W'], p['TW'], p['B']
        if li == 0:
            # All heads share the raw feature input; fold the treat weight into
            # column 0 so the kernel can matmul the raw [t | features] block.
            w_feat = jnp.transpose(W, (1, 0, 2)).reshape(ind, NUM_HEADS * outd)
            w_treat = TW.reshape(1, NUM_HEADS * outd)
            w_full = jnp.concatenate([w_treat, w_feat], axis=0)   # (1+ind, 5*outd)
            packed.append(w_full.T)                               # (5*outd, 1+ind)
        else:
            # Head h's hidden slice connects only to head h's output slice.
            bd = jax.scipy.linalg.block_diag(
                *[W[h] for h in range(NUM_HEADS)])                # (5*ind, 5*outd)
            packed.append(bd.T)                                   # (5*outd, 5*ind)
        if li > 0 and p['istreat']:
            packed.append(TW.reshape(NUM_HEADS * outd, 1))        # (5*outd, 1)
        if p['isbias']:
            packed.append(B.reshape(NUM_HEADS * outd, 1))         # (5*outd, 1)
        plan.append((p['act'], p['istreat'], p['isbias']))
    return packed, tuple(plan)


# ---------------------------------------------------------------------------
# Pure-JAX reference (mirrors the PyTorch forward exactly, masked form)
# ---------------------------------------------------------------------------
def reference_forward(raw, x):
    n = x.shape[0]
    t = x[:, :1]
    feat = x[:, 1:]
    tcol = x[:, 0]
    outdim = raw[-1]['outd']
    out = jnp.zeros((n, outdim), jnp.float32)
    for hd in range(NUM_HEADS):
        h = feat
        for p in raw:
            o = h @ p['W'][hd]
            if p['istreat']:
                o = o + t @ p['TW'][hd]
            if p['isbias']:
                o = o + p['B'][hd]
            h = _apply_act(p['act'], o)
        lo, hi = jnp.float32(PT[hd]), jnp.float32(PT[hd + 1])
        m = (tcol >= lo) & ((tcol < hi) if hd < NUM_HEADS - 1 else (tcol <= hi))
        out = out + m[:, None].astype(jnp.float32) * h
    return out


if __name__ == "__main__":
    # cfg entries: [in_features, out_features, isbias, activation]
    cfg = [[8, 32, 1, 'relu'], [32, 16, 1, 'relu'], [16, 8, 1, 'id']]
    isenhance = 1
    N = 300                               # exercises lane padding (300 -> 384)
    F = cfg[0][0]
    OUTD = cfg[-1][1]

    key = jax.random.PRNGKey(0)
    key, kp, kt, kf = jax.random.split(key, 4)
    raw_params = init_params(kp, cfg, isenhance)
    packed_params, plan = pack_params(raw_params)

    t_col = jax.random.uniform(kt, (N, 1), jnp.float32)          # t in [0, 1)
    feats = jax.random.uniform(kf, (N, F), jnp.float32)
    x = jnp.concatenate([t_col, feats], axis=1)                   # (N, 1+F)

    ref = reference_forward(raw_params, x)

    # Default tile selection (single tile for small N).
    out = multi_head_forward(packed_params, plan, x, OUTD)
    out = jax.block_until_ready(out)
    assert out.shape == (N, OUTD)
    # Default-precision MXU f32 passes may differ in last ulps vs the
    # per-head reference summation order; keep a slightly loose atol.
    assert jnp.allclose(out, ref, rtol=1e-4, atol=1e-3), "mismatch vs reference"

    # Multi-step grid path (3 row tiles of 128 lanes) to exercise the
    # pipelined index maps; production callers should leave tile_n=None.
    out_tiled = multi_head_forward(packed_params, plan, x, OUTD, tile_n=128)
    out_tiled = jax.block_until_ready(out_tiled)
    assert jnp.allclose(out_tiled, ref, rtol=1e-4, atol=1e-3), \
        "mismatch vs reference (tiled)"

    print("KERNEL_OK")
</pallas_src>

<mosaic_0001>
module attributes {stable_mosaic.version = 11 : i64} {
  func.func @_fused_multihead_kernel(%arg0: i32, %arg1: memref<9x384xf32, #tpu.memory_space<vmem>>, %arg2: memref<160x9xf32, #tpu.memory_space<vmem>>, %arg3: memref<160x1xf32, #tpu.memory_space<vmem>>, %arg4: memref<80x160xf32, #tpu.memory_space<vmem>>, %arg5: memref<80x1xf32, #tpu.memory_space<vmem>>, %arg6: memref<80x1xf32, #tpu.memory_space<vmem>>, %arg7: memref<40x80xf32, #tpu.memory_space<vmem>>, %arg8: memref<40x1xf32, #tpu.memory_space<vmem>>, %arg9: memref<40x1xf32, #tpu.memory_space<vmem>>, %arg10: memref<8x384xf32, #tpu.memory_space<vmem>>) attributes {dimension_semantics = [#tpu.dimension_semantics<parallel>], iteration_bounds = array<i64: 1>, scalar_prefetch = 0 : i64, scratch_operands = 0 : i64, tpu.core_type = #tpu.core_type<tc>, window_params = [{transform_indices = @transform_0, window_bounds = array<i64: 9, 384>}, {pipeline_mode = #tpu.pipeline_mode<synchronous>, transform_indices = @transform_1, window_bounds = array<i64: 160, 9>}, {pipeline_mode = #tpu.pipeline_mode<synchronous>, transform_indices = @transform_2, window_bounds = array<i64: 160, 1>}, {pipeline_mode = #tpu.pipeline_mode<synchronous>, transform_indices = @transform_3, window_bounds = array<i64: 80, 160>}, {pipeline_mode = #tpu.pipeline_mode<synchronous>, transform_indices = @transform_4, window_bounds = array<i64: 80, 1>}, {pipeline_mode = #tpu.pipeline_mode<synchronous>, transform_indices = @transform_5, window_bounds = array<i64: 80, 1>}, {pipeline_mode = #tpu.pipeline_mode<synchronous>, transform_indices = @transform_6, window_bounds = array<i64: 40, 80>}, {pipeline_mode = #tpu.pipeline_mode<synchronous>, transform_indices = @transform_7, window_bounds = array<i64: 40, 1>}, {pipeline_mode = #tpu.pipeline_mode<synchronous>, transform_indices = @transform_8, window_bounds = array<i64: 40, 1>}, {transform_indices = @transform_9, window_bounds = array<i64: 8, 384>}]} {
    %c0 = arith.constant 0 : index
    %c0_0 = arith.constant 0 : index
    %0 = vector.load %arg1[%c0, %c0_0] : memref<9x384xf32, #tpu.memory_space<vmem>>, vector<9x384xf32>
    %1 = vector.extract_strided_slice %0 {offsets = [0, 0], sizes = [1, 384], strides = [1, 1]} : vector<9x384xf32> to vector<1x384xf32>
    %c0_1 = arith.constant 0 : index
    %c0_2 = arith.constant 0 : index
    %2 = vector.load %arg2[%c0_1, %c0_2] : memref<160x9xf32, #tpu.memory_space<vmem>>, vector<160x9xf32>
    %cst = arith.constant dense<0.000000e+00> : vector<160x384xf32>
    %3 = tpu.matmul %2, %0, %cst {dimension_numbers = #tpu.dot_dimension_numbers<[1], [0], [0], [1], [0, 0, 1, 1], [], []>} : vector<160x9xf32>, vector<9x384xf32>, vector<160x384xf32> -> vector<160x384xf32>
    %c0_3 = arith.constant 0 : index
    %c0_4 = arith.constant 0 : index
    %4 = vector.load %arg3[%c0_3, %c0_4] : memref<160x1xf32, #tpu.memory_space<vmem>>, vector<160x1xf32>
    %5 = vector.broadcast %4 : vector<160x1xf32> to vector<160x384xf32>
    %6 = arith.addf %3, %5 : vector<160x384xf32>
    %cst_5 = arith.constant 0.000000e+00 : f32
    %7 = vector.broadcast %cst_5 : f32 to vector<160x384xf32>
    %8 = arith.maximumf %6, %7 : vector<160x384xf32>
    %c0_6 = arith.constant 0 : index
    %c0_7 = arith.constant 0 : index
    %9 = vector.load %arg4[%c0_6, %c0_7] : memref<80x160xf32, #tpu.memory_space<vmem>>, vector<80x160xf32>
    %cst_8 = arith.constant dense<0.000000e+00> : vector<80x384xf32>
    %10 = tpu.matmul %9, %8, %cst_8 {dimension_numbers = #tpu.dot_dimension_numbers<[1], [0], [0], [1], [0, 0, 1, 1], [], []>} : vector<80x160xf32>, vector<160x384xf32>, vector<80x384xf32> -> vector<80x384xf32>
    %c0_9 = arith.constant 0 : index
    %c0_10 = arith.constant 0 : index
    %11 = vector.load %arg5[%c0_9, %c0_10] : memref<80x1xf32, #tpu.memory_space<vmem>>, vector<80x1xf32>
    %12 = vector.broadcast %11 : vector<80x1xf32> to vector<80x384xf32>
    %13 = vector.broadcast %1 : vector<1x384xf32> to vector<80x384xf32>
    %14 = arith.mulf %12, %13 : vector<80x384xf32>
    %15 = arith.addf %10, %14 : vector<80x384xf32>
    %c0_11 = arith.constant 0 : index
    %c0_12 = arith.constant 0 : index
    %16 = vector.load %arg6[%c0_11, %c0_12] : memref<80x1xf32, #tpu.memory_space<vmem>>, vector<80x1xf32>
    %17 = vector.broadcast %16 : vector<80x1xf32> to vector<80x384xf32>
    %18 = arith.addf %15, %17 : vector<80x384xf32>
    %cst_13 = arith.constant 0.000000e+00 : f32
    %19 = vector.broadcast %cst_13 : f32 to vector<80x384xf32>
    %20 = arith.maximumf %18, %19 : vector<80x384xf32>
    %c0_14 = arith.constant 0 : index
    %c0_15 = arith.constant 0 : index
    %21 = vector.load %arg7[%c0_14, %c0_15] : memref<40x80xf32, #tpu.memory_space<vmem>>, vector<40x80xf32>
    %cst_16 = arith.constant dense<0.000000e+00> : vector<40x384xf32>
    %22 = tpu.matmul %21, %20, %cst_16 {dimension_numbers = #tpu.dot_dimension_numbers<[1], [0], [0], [1], [0, 0, 1, 1], [], []>} : vector<40x80xf32>, vector<80x384xf32>, vector<40x384xf32> -> vector<40x384xf32>
    %c0_17 = arith.constant 0 : index
    %c0_18 = arith.constant 0 : index
    %23 = vector.load %arg8[%c0_17, %c0_18] : memref<40x1xf32, #tpu.memory_space<vmem>>, vector<40x1xf32>
    %24 = vector.broadcast %23 : vector<40x1xf32> to vector<40x384xf32>
    %25 = vector.broadcast %1 : vector<1x384xf32> to vector<40x384xf32>
    %26 = arith.mulf %24, %25 : vector<40x384xf32>
    %27 = arith.addf %22, %26 : vector<40x384xf32>
    %c0_19 = arith.constant 0 : index
    %c0_20 = arith.constant 0 : index
    %28 = vector.load %arg9[%c0_19, %c0_20] : memref<40x1xf32, #tpu.memory_space<vmem>>, vector<40x1xf32>
    %29 = vector.broadcast %28 : vector<40x1xf32> to vector<40x384xf32>
    %30 = arith.addf %27, %29 : vector<40x384xf32>
    %cst_21 = arith.constant 0.000000e+00 : f32
    %31 = vector.broadcast %cst_21 : f32 to vector<8x384xf32>
    %cst_22 = arith.constant 0.000000e+00 : f32
    %32 = vector.broadcast %cst_22 : f32 to vector<1x384xf32>
    %33 = arith.cmpf oge, %1, %32 : vector<1x384xf32>
    %cst_23 = arith.constant 2.000000e-01 : f32
    %34 = vector.broadcast %cst_23 : f32 to vector<1x384xf32>
    %35 = arith.cmpf olt, %1, %34 : vector<1x384xf32>
    %36 = arith.andi %33, %35 : vector<1x384xi1>
    %37 = arith.extui %36 : vector<1x384xi1> to vector<1x384xi32>
    %38 = arith.sitofp %37 : vector<1x384xi32> to vector<1x384xf32>
    %39 = vector.extract_strided_slice %30 {offsets = [0, 0], sizes = [8, 384], strides = [1, 1]} : vector<40x384xf32> to vector<8x384xf32>
    %40 = vector.broadcast %38 : vector<1x384xf32> to vector<8x384xf32>
    %41 = arith.mulf %40, %39 : vector<8x384xf32>
    %42 = arith.addf %31, %41 : vector<8x384xf32>
    %cst_24 = arith.constant 2.000000e-01 : f32
    %43 = vector.broadcast %cst_24 : f32 to vector<1x384xf32>
    %44 = arith.cmpf oge, %1, %43 : vector<1x384xf32>
    %cst_25 = arith.constant 4.000000e-01 : f32
    %45 = vector.broadcast %cst_25 : f32 to vector<1x384xf32>
    %46 = arith.cmpf olt, %1, %45 : vector<1x384xf32>
    %47 = arith.andi %44, %46 : vector<1x384xi1>
    %48 = arith.extui %47 : vector<1x384xi1> to vector<1x384xi32>
    %49 = arith.sitofp %48 : vector<1x384xi32> to vector<1x384xf32>
    %50 = vector.extract_strided_slice %30 {offsets = [8, 0], sizes = [8, 384], strides = [1, 1]} : vector<40x384xf32> to vector<8x384xf32>
    %51 = vector.broadcast %49 : vector<1x384xf32> to vector<8x384xf32>
    %52 = arith.mulf %51, %50 : vector<8x384xf32>
    %53 = arith.addf %42, %52 : vector<8x384xf32>
    %cst_26 = arith.constant 4.000000e-01 : f32
    %54 = vector.broadcast %cst_26 : f32 to vector<1x384xf32>
    %55 = arith.cmpf oge, %1, %54 : vector<1x384xf32>
    %cst_27 = arith.constant 6.000000e-01 : f32
    %56 = vector.broadcast %cst_27 : f32 to vector<1x384xf32>
    %57 = arith.cmpf olt, %1, %56 : vector<1x384xf32>
    %58 = arith.andi %55, %57 : vector<1x384xi1>
    %59 = arith.extui %58 : vector<1x384xi1> to vector<1x384xi32>
    %60 = arith.sitofp %59 : vector<1x384xi32> to vector<1x384xf32>
    %61 = vector.extract_strided_slice %30 {offsets = [16, 0], sizes = [8, 384], strides = [1, 1]} : vector<40x384xf32> to vector<8x384xf32>
    %62 = vector.broadcast %60 : vector<1x384xf32> to vector<8x384xf32>
    %63 = arith.mulf %62, %61 : vector<8x384xf32>
    %64 = arith.addf %53, %63 : vector<8x384xf32>
    %cst_28 = arith.constant 6.000000e-01 : f32
    %65 = vector.broadcast %cst_28 : f32 to vector<1x384xf32>
    %66 = arith.cmpf oge, %1, %65 : vector<1x384xf32>
    %cst_29 = arith.constant 8.000000e-01 : f32
    %67 = vector.broadcast %cst_29 : f32 to vector<1x384xf32>
    %68 = arith.cmpf olt, %1, %67 : vector<1x384xf32>
    %69 = arith.andi %66, %68 : vector<1x384xi1>
    %70 = arith.extui %69 : vector<1x384xi1> to vector<1x384xi32>
    %71 = arith.sitofp %70 : vector<1x384xi32> to vector<1x384xf32>
    %72 = vector.extract_strided_slice %30 {offsets = [24, 0], sizes = [8, 384], strides = [1, 1]} : vector<40x384xf32> to vector<8x384xf32>
    %73 = vector.broadcast %71 : vector<1x384xf32> to vector<8x384xf32>
    %74 = arith.mulf %73, %72 : vector<8x384xf32>
    %75 = arith.addf %64, %74 : vector<8x384xf32>
    %cst_30 = arith.constant 8.000000e-01 : f32
    %76 = vector.broadcast %cst_30 : f32 to vector<1x384xf32>
    %77 = arith.cmpf oge, %1, %76 : vector<1x384xf32>
    %cst_31 = arith.constant 1.000000e+00 : f32
    %78 = vector.broadcast %cst_31 : f32 to vector<1x384xf32>
    %79 = arith.cmpf ole, %1, %78 : vector<1x384xf32>
    %80 = arith.andi %77, %79 : vector<1x384xi1>
    %81 = arith.extui %80 : vector<1x384xi1> to vector<1x384xi32>
    %82 = arith.sitofp %81 : vector<1x384xi32> to vector<1x384xf32>
    %83 = vector.extract_strided_slice %30 {offsets = [32, 0], sizes = [8, 384], strides = [1, 1]} : vector<40x384xf32> to vector<8x384xf32>
    %84 = vector.broadcast %82 : vector<1x384xf32> to vector<8x384xf32>
    %85 = arith.mulf %84, %83 : vector<8x384xf32>
    %86 = arith.addf %75, %85 : vector<8x384xf32>
    %c0_32 = arith.constant 0 : index
    %c0_33 = arith.constant 0 : index
    %87 = vector.load %arg10[%c0_32, %c0_33] : memref<8x384xf32, #tpu.memory_space<vmem>>, vector<8x384xf32>
    tpu.vector_store %arg10[%c0_32, %c0_33], %86 {strides = array<i32>} : memref<8x384xf32, #tpu.memory_space<vmem>>, vector<8x384xf32>,
    return
  }
  func.func @transform_0(%arg0: i32) -> (i32, i32) {
    %c0_i32 = arith.constant 0 : i32
    %c0_i32_0 = arith.constant 0 : i32
    return %c0_i32, %arg0 : i32, i32
  }
  func.func @transform_1(%arg0: i32) -> (i32, i32) {
    %c0_i32 = arith.constant 0 : i32
    %c0_i32_0 = arith.constant 0 : i32
    %c0_i32_1 = arith.constant 0 : i32
    return %c0_i32, %c0_i32_0 : i32, i32
  }
  func.func @transform_2(%arg0: i32) -> (i32, i32) {
    %c0_i32 = arith.constant 0 : i32
    %c0_i32_0 = arith.constant 0 : i32
    %c0_i32_1 = arith.constant 0 : i32
    return %c0_i32, %c0_i32_0 : i32, i32
  }
  func.func @transform_3(%arg0: i32) -> (i32, i32) {
    %c0_i32 = arith.constant 0 : i32
    %c0_i32_0 = arith.constant 0 : i32
    %c0_i32_1 = arith.constant 0 : i32
    return %c0_i32, %c0_i32_0 : i32, i32
  }
  func.func @transform_4(%arg0: i32) -> (i32, i32) {
    %c0_i32 = arith.constant 0 : i32
    %c0_i32_0 = arith.constant 0 : i32
    %c0_i32_1 = arith.constant 0 : i32
    return %c0_i32, %c0_i32_0 : i32, i32
  }
  func.func @transform_5(%arg0: i32) -> (i32, i32) {
    %c0_i32 = arith.constant 0 : i32
    %c0_i32_0 = arith.constant 0 : i32
    %c0_i32_1 = arith.constant 0 : i32
    return %c0_i32, %c0_i32_0 : i32, i32
  }
  func.func @transform_6(%arg0: i32) -> (i32, i32) {
    %c0_i32 = arith.constant 0 : i32
    %c0_i32_0 = arith.constant 0 : i32
    %c0_i32_1 = arith.constant 0 : i32
    return %c0_i32, %c0_i32_0 : i32, i32
  }
  func.func @transform_7(%arg0: i32) -> (i32, i32) {
    %c0_i32 = arith.constant 0 : i32
    %c0_i32_0 = arith.constant 0 : i32
    %c0_i32_1 = arith.constant 0 : i32
    return %c0_i32, %c0_i32_0 : i32, i32
  }
  func.func @transform_8(%arg0: i32) -> (i32, i32) {
    %c0_i32 = arith.constant 0 : i32
    %c0_i32_0 = arith.constant 0 : i32
    %c0_i32_1 = arith.constant 0 : i32
    return %c0_i32, %c0_i32_0 : i32, i32
  }
  func.func @transform_9(%arg0: i32) -> (i32, i32) {
    %c0_i32 = arith.constant 0 : i32
    %c0_i32_0 = arith.constant 0 : i32
    return %c0_i32, %arg0 : i32, i32
  }
}

</mosaic_0001>

<bundles_post_ra>
// kernel: tpu_custom_call.1
= control target key start
LH: loop header
LB: loop body
LE: loop exit
PB: predicated region body
PF: predicated region fallthrough
CT: control target
= control target key end

     0   :  { %vm240_vm0 = vcmask 1040384   ;;  %vm1997_vm1 = vmmov 1   ;;  %vm179_vm3 = vcmask 72704   ;;  %v1998_v9 = vmov 0.0   ;;  %s2980_s0 = inlined_call_operand.vmem [shape: f32[9,384], index: 0, kind: input, shape index: {}]   ;;  %s2981_s1 = inlined_call_operand.vmem [shape: f32[160,9], index: 1, kind: input, shape index: {}]   ;;  %s2982_s2 = inlined_call_operand.vmem [shape: f32[160,1], index: 2, kind: input, shape index: {}]   ;;  %s2983_s3 = inlined_call_operand.vmem [shape: f32[80,160], index: 3, kind: input, shape index: {}]   ;;  %s2984_s4 = inlined_call_operand.vmem [shape: f32[80,1], index: 4, kind: input, shape index: {}]   ;;  %s2985_s5 = inlined_call_operand.vmem [shape: f32[80,1], index: 5, kind: input, shape index: {}]   ;;  %s2986_s6 = inlined_call_operand.vmem [shape: f32[40,80], index: 6, kind: input, shape index: {}]   ;;  %s2987_s7 = inlined_call_operand.vmem [shape: f32[40,1], index: 7, kind: input, shape index: {}]   ;;  %s2988_s8 = inlined_call_operand.vmem [shape: f32[40,1], index: 8, kind: input, shape index: {}]   ;;  %s2989_s9 = inlined_call_operand.hbm [shape: f32[8,384], index: 9, kind: output, shape index: {}]  }
   0x1   :  { %v34_v0 = vld [vmem:[%s2980_s0 + $0x8] sm:$0xff]  ;;  %v37_v1 = vld [vmem:[%s2980_s0 + $0x20] sm:$0x1]  ;;  %v35_v2 = vld [vmem:[%s2980_s0 + $0x10] sm:$0xff]  ;;  %314 = vmatprep.mubr.f32.mxu0 %v1998_v9  ;;  %v1999_v11 = vmov 0  }
   0x2   :  { %v1845_v3 = vpack.c.bf16 %v37_v1, %v34_v0  ;;  %vm2062_vm2 = vmpackc.low %vm240_vm0, %vm1997_vm1  ;;  %v38_v5 = vld [vmem:[%s2980_s0 + $0x28] sm:$0x1]  ;;  %v33_v6 = vld [vmem:[%s2980_s0] sm:$0xff]  ;;  %1968 = vset.pattern.permute.xlu0 %v1999_v11  ;;  %1969 = vset.pattern.permute.xlu1 %v1999_v11 }
   0x3   :  { %v1851_v7 = vpack.c.bf16 %v38_v5, %v35_v2  ;;  %v36_v8 = vld [vmem:[%s2980_s0 + $0x18] sm:$0x1]  ;;  %v39_v10 = vld [vmem:[%s2981_s1] sm:$0xff]  ;;  %v40_v14 = vld [vmem:[%s2981_s1 + $0x8] sm:$0xff] }
   0x4   :  { %1847 = vmatprep.subr.msk.bf16.mxu0 %vm2062_vm2, %v1845_v3  ;;  %v1848_v12 = vpack.c.bf16 %v36_v8, %v33_v6  ;;  %1780 = vmatprep.mubr.msk.f32.mxu1 %vm179_vm3, %v39_v10  ;;  %v59_v13 = vld [vmem:[%s2982_s2] sm:$0xff]  ;;  %v41_v15 = vld [vmem:[%s2981_s1 + $0x10] sm:$0xff]  ;;  %v60_v17 = vld [vmem:[%s2982_s2 + $0x8] sm:$0xff] }
   0x5   :  { %1853 = vmatprep.subr.msk.bf16.mxu1 %vm2062_vm2, %v1851_v7  ;;  %81 = vperm.xlu0 %1968, %v59_v13   ;;  %v61_v16 = vld [vmem:[%s2982_s2 + $0x10] sm:$0xff]  ;;  %v62_v18 = vld [vmem:[%s2982_s2 + $0x18] sm:$0xff]  ;;  %v43_v20 = vld [vmem:[%s2981_s1 + $0x20] sm:$0xff] }
   0x6   :  { %1850 = vmatpush1.bf16.msk.msra.mxu0 %vm2062_vm2, %v1848_v12  ;;  %1856 = vmatpush3.bf16.msk.msra.mxu1 %vm2062_vm2, %v1851_v7  ;;  %v42_v19 = vld [vmem:[%s2981_s1 + $0x18] sm:$0xff]  ;;  %v63_v21 = vld [vmem:[%s2982_s2 + $0x20] sm:$0xff]  ;;  %v64_v22 = vld [vmem:[%s2982_s2 + $0x28] sm:$0xff] }
   0x7   :  { %91 = vperm.xlu1 %1969, %v61_v16   ;;  %v44_v23 = vld [vmem:[%s2981_s1 + $0x28] sm:$0xff]  ;;  %v45_v24 = vld [vmem:[%s2981_s1 + $0x30] sm:$0xff]  ;;  %v66_v26 = vld [vmem:[%s2982_s2 + $0x38] sm:$0xff] }
   0x8   :  { %v65_v25 = vld [vmem:[%s2982_s2 + $0x30] sm:$0xff]  ;;  %v46_v27 = vld [vmem:[%s2981_s1 + $0x38] sm:$0xff]  ;;  %v47_v28 = vld [vmem:[%s2981_s1 + $0x40] sm:$0xff] }
   0x9   :  { %1653 = vmatmul.mubr.msk.f32.vlgmr.msra.gmra.mrb[0].mxu0 %vm179_vm3, %v39_v10  ;;  %1781 = vmatmul.mubr.msk.f32.vlgmr.msra.gmra.mrb[0].mxu1 %vm179_vm3, %v40_v14  ;;  %v67_v29 = vld [vmem:[%s2982_s2 + $0x40] sm:$0xff]  ;;  %v68_v30 = vld [vmem:[%s2982_s2 + $0x48] sm:$0xff]  ;;  %v49_v32 = vld [vmem:[%s2981_s1 + $0x50] sm:$0xff] }
   0xa   :  { %320 = vmatprep.mubr.f32.mxu0 %v1998_v9  ;;  %1783 = vmatprep.mubr.msk.f32.mxu1 %vm179_vm3, %v41_v15  ;;  %v48_v31 = vld [vmem:[%s2981_s1 + $0x48] sm:$0xff]  ;;  %v69_v33 = vld [vmem:[%s2982_s2 + $0x50] sm:$0xff]  ;;  %v70_v34 = vld [vmem:[%s2982_s2 + $0x58] sm:$0xff] }
   0xb   :  { %86 = vperm.xlu0 %1968, %v60_v17   ;;  %96 = vperm.xlu1 %1969, %v62_v18   ;;  %v50_v35 = vld [vmem:[%s2981_s1 + $0x58] sm:$0xff] }
   0xd   :  { %1654 = vmatmul.mubr.msk.f32.gmra.mrb[2].mxu0 %vm179_vm3, %v40_v14  ;;  %1784 = vmatmul.mubr.msk.f32.gmra.mrb[2].mxu1 %vm179_vm3, %v42_v19 }
   0xe   :  { %326 = vmatprep.mubr.f32.mxu0 %v1998_v9  ;;  %1786 = vmatprep.mubr.msk.f32.mxu1 %vm179_vm3, %v43_v20 }
   0xf   :  { %101 = vperm.xlu0 %1968, %v63_v21   ;;  %106 = vperm.xlu1 %1969, %v64_v22  }
  0x11   :  { %1655 = vmatmul.mubr.msk.f32.gmra.mrb[4].mxu0 %vm179_vm3, %v41_v15  ;;  %1787 = vmatmul.mubr.msk.f32.gmra.mrb[4].mxu1 %vm179_vm3, %v44_v23 }
  0x12   :  { %332 = vmatprep.mubr.f32.mxu0 %v1998_v9  ;;  %1789 = vmatprep.mubr.msk.f32.mxu1 %vm179_vm3, %v45_v24 }
  0x13   :  { %111 = vperm.xlu0 %1968, %v65_v25   ;;  %116 = vperm.xlu1 %1969, %v66_v26  }
  0x15   :  { %1656 = vmatmul.mubr.msk.f32.gmra.mrb[6].mxu0 %vm179_vm3, %v42_v19  ;;  %1790 = vmatmul.mubr.msk.f32.gmra.mrb[6].mxu1 %vm179_vm3, %v46_v27 }
  0x16   :  { %338 = vmatprep.mubr.f32.mxu0 %v1998_v9  ;;  %1792 = vmatprep.mubr.msk.f32.mxu1 %vm179_vm3, %v47_v28 }
  0x17   :  { %121 = vperm.xlu0 %1968, %v67_v29   ;;  %126 = vperm.xlu1 %1969, %v68_v30  }
  0x19   :  { %1657 = vmatmul.mubr.msk.f32.gmra.mrb[8].mxu0 %vm179_vm3, %v43_v20  ;;  %1793 = vmatmul.mubr.msk.f32.gmra.mrb[8].mxu1 %vm179_vm3, %v48_v31 }
  0x1a   :  { %344 = vmatprep.mubr.f32.mxu0 %v1998_v9  ;;  %1795 = vmatprep.mubr.msk.f32.mxu1 %vm179_vm3, %v49_v32 }
  0x1b   :  { %14 = vsyncpa [#allocation3], 0  ;;  %v51_v36 = vld [vmem:[%s2981_s1 + $0x60] sm:$0xff]  ;;  %131 = vperm.xlu0 %1968, %v69_v33   ;;  %136 = vperm.xlu1 %1969, %v70_v34   ;;  %v72_v38 = vld [vmem:[%s2982_s2 + $0x68] sm:$0xff]  ;;  %v2000_v17 = vmov 0.0|0.0   ;;  %vm782_vm4 = vcmask 261120  }
  0x1c   :  { %v71_v37 = vld [vmem:[%s2982_s2 + $0x60] sm:$0xff]  ;;  %v52_v39 = vld [vmem:[%s2981_s1 + $0x68] sm:$0xff]  ;;  %v2196_v40 = vld [vmem:[%s2981_s1 + $0x70] sm:$0xff]  ;;  %1897 = vmatprep.subr.bf16.mxu0 %v2000_v17  ;;  %vm1223_vm5 = vcmask 654336   ;;  %vm2001_vm6 = vmmov 0  }
  0x1d   :  { %1658 = vmatmul.mubr.msk.f32.gmra.mrb[10].mxu0 %vm179_vm3, %v44_v23  ;;  %1796 = vmatmul.mubr.msk.f32.gmra.mrb[10].mxu1 %vm179_vm3, %v50_v35  ;;  %v73_v41 = vld [vmem:[%s2982_s2 + $0x70] sm:$0xff]  ;;  %v74_v42 = vld [vmem:[%s2982_s2 + $0x78] sm:$0xff]  ;;  %v2215_v44 = vld [vmem:[%s2981_s1 + $0x80] sm:$0xff] }
  0x1e   :  { %350 = vmatprep.mubr.f32.mxu0 %v1998_v9  ;;  %1798 = vmatprep.mubr.msk.f32.mxu1 %vm179_vm3, %v51_v36  ;;  %v54_v43 = vld [vmem:[%s2981_s1 + $0x78] sm:$0xff]  ;;  %v75_v45 = vld [vmem:[%s2982_s2 + $0x80] sm:$0xff]  ;;  %v76_v46 = vld [vmem:[%s2982_s2 + $0x88] sm:$0xff] }
  0x1f   :  { %141 = vperm.xlu0 %1968, %v71_v37   ;;  %146 = vperm.xlu1 %1969, %v72_v38   ;;  %v2231_v47 = vld [vmem:[%s2981_s1 + $0x88] sm:$0xff]  ;;  %v2236_v48 = vld [vmem:[%s2981_s1 + $0x90] sm:$0xff]  ;;  %v78_v50 = vld [vmem:[%s2982_s2 + $0x98] sm:$0xff] }
  0x20   :  { %v77_v49 = vld [vmem:[%s2982_s2 + $0x90] sm:$0xff]  ;;  %v2253_v51 = vld [vmem:[%s2981_s1 + $0x98] sm:$0xff]  ;;  %v680_v52 = vld [vmem:[%s2984_s4] sm:$0xff] }
  0x21   :  { %1659 = vmatmul.mubr.msk.f32.gmra.mrb[12].mxu0 %vm179_vm3, %v45_v24  ;;  %1799 = vmatmul.mubr.msk.f32.gmra.mrb[12].mxu1 %vm179_vm3, %v52_v39  ;;  %v681_v53 = vld [vmem:[%s2984_s4 + $0x8] sm:$0xff]  ;;  %v682_v54 = vld [vmem:[%s2984_s4 + $0x10] sm:$0xff]  ;;  %v683_v55 = vld [vmem:[%s2984_s4 + $0x18] sm:$0xff] }
  0x22   :  { %356 = vmatprep.mubr.f32.mxu0 %v1998_v9  ;;  %1801 = vmatprep.mubr.msk.f32.mxu1 %vm179_vm3, %v2196_v40  ;;  %v1053_v56 = vld [vmem:[%s2985_s5] sm:$0xff]  ;;  %v1054_v57 = vld [vmem:[%s2985_s5 + $0x8] sm:$0xff]  ;;  %v1055_v60 = vld [vmem:[%s2985_s5 + $0x10] sm:$0xff] }
  0x23   :  { %151 = vperm.xlu0 %1968, %v73_v41   ;;  %156 = vperm.xlu1 %1969, %v74_v42   ;;  %v684_v58 = vld [vmem:[%s2984_s4 + $0x20] sm:$0xff]  ;;  %v685_v59 = vld [vmem:[%s2984_s4 + $0x28] sm:$0xff]  ;;  %v1056_v61 = vld [vmem:[%s2985_s5 + $0x18] sm:$0xff] }
  0x24   :  { %v686_v62 = vld [vmem:[%s2984_s4 + $0x30] sm:$0xff]  ;;  %v687_v63 = vld [vmem:[%s2984_s4 + $0x38] sm:$0xff]  ;;  %v1057_v0 = vld [vmem:[%s2985_s5 + $0x20] sm:$0xff] }
  0x25   :  { %1660 = vmatmul.mubr.msk.f32.gmra.mrb[14].mxu0 %vm179_vm3, %v46_v27  ;;  %1802 = vmatmul.mubr.msk.f32.gmra.mrb[14].mxu1 %vm179_vm3, %v54_v43  ;;  %v1058_v1 = vld [vmem:[%s2985_s5 + $0x28] sm:$0xff]  ;;  %v688_v2 = vld [vmem:[%s2984_s4 + $0x40] sm:$0xff]  ;;  %v1059_v4 = vld [vmem:[%s2985_s5 + $0x30] sm:$0xff] }
  0x26   :  { %362 = vmatprep.mubr.f32.mxu0 %v1998_v9  ;;  %1804 = vmatprep.mubr.msk.f32.mxu1 %vm179_vm3, %v2215_v44  ;;  %v689_v3 = vld [vmem:[%s2984_s4 + $0x48] sm:$0xff]  ;;  %v1060_v5 = vld [vmem:[%s2985_s5 + $0x38] sm:$0xff]  ;;  %v1061_v6 = vld [vmem:[%s2985_s5 + $0x40] sm:$0xff] }
  0x27   :  { %161 = vperm.xlu0 %1968, %v75_v45   ;;  %166 = vperm.xlu1 %1969, %v76_v46   ;;  %v1062_v7 = vld [vmem:[%s2985_s5 + $0x48] sm:$0xff]  ;;  %v1178_v8 = vld [vmem:[%s2987_s7] sm:$0xff]  ;;  %v1180_v11 = vld [vmem:[%s2987_s7 + $0x10] sm:$0xff] }
  0x28   :  { %v1179_v10 = vld [vmem:[%s2987_s7 + $0x8] sm:$0xff]  ;;  %v1181_v12 = vld [vmem:[%s2987_s7 + $0x18] sm:$0xff]  ;;  %v1424_v13 = vld [vmem:[%s2988_s8] sm:$0xff] }
  0x29   :  { %1661 = vmatmul.mubr.msk.f32.gmra.mrb[16].mxu0 %vm179_vm3, %v47_v28  ;;  %1805 = vmatmul.mubr.msk.f32.gmra.mrb[16].mxu1 %vm179_vm3, %v2231_v47  ;;  %v1425_v14 = vld [vmem:[%s2988_s8 + $0x8] sm:$0xff]  ;;  %v1182_v15 = vld [vmem:[%s2987_s7 + $0x20] sm:$0xff]  ;;  %v1426_v16 = vld [vmem:[%s2988_s8 + $0x10] sm:$0xff] }
  0x2a   :  { %368 = vmatprep.mubr.f32.mxu0 %v1998_v9  ;;  %1807 = vmatprep.mubr.msk.f32.mxu1 %vm179_vm3, %v2236_v48  ;;  %v1427_v18 = vld [vmem:[%s2988_s8 + $0x18] sm:$0xff]  ;;  %v1428_v19 = vld [vmem:[%s2988_s8 + $0x20] sm:$0xff]  ;;  %v661_v20 = vld [vmem:[%s2983_s3 + $0x8] sm:$0xff] }
  0x2b   :  { %171 = vperm.xlu0 %1968, %v77_v49   ;;  %176 = vperm.xlu1 %1969, %v78_v50  }
  0x2d   :  { %1662 = vmatmul.mubr.msk.f32.gmra.mrb[18].mxu0 %vm179_vm3, %v48_v31  ;;  %1808 = vmatmul.mubr.msk.f32.gmra.mrb[18].mxu1 %vm179_vm3, %v2253_v51 }
  0x2e   :  { %374 = vmatprep.mubr.f32.mxu0 %v1998_v9  ;;  %1694 = vmatprep.mubr.msk.f32.mxu1 %vm782_vm4, %v661_v20 }
  0x2f   :  { %692 = vperm.xlu0 %1968, %v680_v52   ;;  %697 = vperm.xlu1 %1969, %v681_v53  }
  0x31   :  { %1663 = vmatmul.mubr.msk.f32.gmra.mrb[20].mxu0 %vm179_vm3, %v49_v32 }
  0x32   :  { %380 = vmatprep.mubr.f32.mxu0 %v1998_v9 }
  0x33   :  { %702 = vperm.xlu0 %1968, %v682_v54   ;;  %707 = vperm.xlu1 %1969, %v683_v55  }
  0x35   :  { %1664 = vmatmul.mubr.msk.f32.gmra.mrb[22].mxu0 %vm179_vm3, %v50_v35 }
  0x36   :  { %386 = vmatprep.mubr.f32.mxu0 %v1998_v9 }
  0x37   :  { %1065 = vperm.xlu0 %1968, %v1053_v56   ;;  %1070 = vperm.xlu1 %1969, %v1054_v57  }
  0x39   :  { %1665 = vmatmul.mubr.msk.f32.gmra.mrb[24].mxu0 %vm179_vm3, %v51_v36 }
  0x3a   :  { %392 = vmatprep.mubr.f32.mxu0 %v1998_v9 }
  0x3b   :  { %712 = vperm.xlu0 %1968, %v684_v58   ;;  %717 = vperm.xlu1 %1969, %v685_v59  }
  0x3d   :  { %1666 = vmatmul.mubr.msk.f32.gmra.mrb[26].mxu0 %vm179_vm3, %v52_v39 }
  0x3e   :  { %398 = vmatprep.mubr.f32.mxu0 %v1998_v9 }
  0x3f   :  { %1075 = vperm.xlu0 %1968, %v1055_v60   ;;  %1080 = vperm.xlu1 %1969, %v1056_v61  }
  0x41   :  { %1667 = vmatmul.mubr.msk.f32.gmra.mrb[28].mxu0 %vm179_vm3, %v2196_v40 }
  0x42   :  { %404 = vmatprep.mubr.f32.mxu0 %v1998_v9 }
  0x43   :  { %722 = vperm.xlu0 %1968, %v686_v62   ;;  %727 = vperm.xlu1 %1969, %v687_v63  }
  0x45   :  { %1668 = vmatmul.mubr.msk.f32.gmra.mrb[30].mxu0 %vm179_vm3, %v54_v43 }
  0x46   :  { %410 = vmatprep.mubr.f32.mxu0 %v1998_v9 }
  0x47   :  { %1085 = vperm.xlu0 %1968, %v1057_v0   ;;  %1090 = vperm.xlu1 %1969, %v1058_v1  }
  0x49   :  { %1669 = vmatmul.mubr.msk.f32.gmra.mrb[32].mxu0 %vm179_vm3, %v2215_v44 }
  0x4a   :  { %416 = vmatprep.mubr.f32.mxu0 %v1998_v9 }
  0x4b   :  { %732 = vperm.xlu0 %1968, %v688_v2   ;;  %737 = vperm.xlu1 %1969, %v689_v3  }
  0x4d   :  { %1670 = vmatmul.mubr.msk.f32.gmra.mrb[34].mxu0 %vm179_vm3, %v2231_v47 }
  0x4e   :  { %422 = vmatprep.mubr.f32.mxu0 %v1998_v9 }
  0x4f   :  { %1095 = vperm.xlu0 %1968, %v1059_v4   ;;  %1100 = vperm.xlu1 %1969, %v1060_v5  }
  0x51   :  { %1671 = vmatmul.mubr.msk.f32.gmra.mrb[36].mxu0 %vm179_vm3, %v2236_v48 }
  0x52   :  { %428 = vmatprep.mubr.f32.mxu0 %v1998_v9 }
  0x53   :  { %1105 = vperm.xlu0 %1968, %v1061_v6   ;;  %1110 = vperm.xlu1 %1969, %v1062_v7  }
  0x55   :  { %1672 = vmatmul.mubr.msk.f32.gmra.mrb[38].mxu0 %vm179_vm3, %v2253_v51 }
  0x56   :  { %1704 = vmatprep.mubr.msk.f32.mxu0 %vm782_vm4, %v661_v20 }
  0x57   :  { %1185 = vperm.xlu0 %1968, %v1178_v8   ;;  %1190 = vperm.xlu1 %1969, %v1179_v10  }
  0x5b   :  { %1195 = vperm.xlu0 %1968, %v1180_v11   ;;  %1200 = vperm.xlu1 %1969, %v1181_v12  }
  0x5f   :  { %1431 = vperm.xlu0 %1968, %v1424_v13   ;;  %1436 = vperm.xlu1 %1969, %v1425_v14  }
  0x63   :  { %1205 = vperm.xlu0 %1968, %v1182_v15   ;;  %1441 = vperm.xlu1 %1969, %v1426_v16  }
  0x67   :  { %1446 = vperm.xlu0 %1968, %v1427_v18   ;;  %1451 = vperm.xlu1 %1969, %v1428_v19  }
  0x84   :  { %v82_v21 = vpop.permute.xlu0 %81 }
  0x86   :  { %v92_v22 = vpop.permute.xlu1 %91 }
  0x8a   :  { %v87_v23 = vpop.permute.xlu0 %86  ;;  %v97_v24 = vpop.permute.xlu1 %96 }
  0x8e   :  { %v2379_v25 = vpop.permute.xlu0 %101  ;;  %v2381_v26 = vpop.permute.xlu1 %106 }
  0x92   :  { %v2383_v27 = vpop.permute.xlu0 %111  ;;  %v2385_v28 = vpop.permute.xlu1 %116 }
  0x96   :  { %v2387_v29 = vpop.permute.xlu0 %121  ;;  %v2389_v30 = vpop.permute.xlu1 %126 }
  0x9a   :  { %v2391_v37 = vpop.permute.xlu0 %131  ;;  %v2393_v38 = vpop.permute.xlu1 %136 }
  0x9e   :  { %v2398_v3 = vpop.permute.xlu0 %141  ;;  %v2400_v4 = vpop.permute.xlu1 %146 }
  0xdc   :  { %v316_v31 = vpop.f32.mrb[0].mxu0  ;;  %v1782_v32 = vpop.f32.mrb[0].mxu1 }
  0xdd   :  { %v507_v33 = vadd.f32 %v1782_v32, %v87_v23  ;;  %v318_v34 = vpop.f32.mrb[1].mxu0  ;;  %v501_v35 = vpop.f32.mrb[1].mxu1  ;;  %v317_v39 = vadd.f32 %v316_v31, %v82_v21 }
  0xde   :  { %v502_v36 = vadd.f32 %v501_v35, %v82_v21  ;;  %v319_v41 = vadd.f32 %v318_v34, %v82_v21 }
  0xdf   :  { %v605_v40 = vmax.f32 %v507_v33, 0.0  ;;  %v600_v52 = vmax.f32 %v317_v39, 0.0 }
  0xe0   :  { %v602_v42 = vmax.f32 %v502_v36, 0.0  ;;  %v322_v43 = vpop.f32.mrb[2].mxu0  ;;  %v1785_v44 = vpop.f32.mrb[2].mxu1  ;;  %v601_v55 = vmax.f32 %v319_v41, 0.0 }
  0xe1   :  { %v323_v45 = vadd.f32 %v322_v43, %v87_v23  ;;  %v517_v46 = vadd.f32 %v1785_v44, %v97_v24  ;;  %v324_v47 = vpop.f32.mrb[3].mxu0  ;;  %v511_v48 = vpop.f32.mrb[3].mxu1 }
  0xe2   :  { %v1898_v49 = vpack.c.bf16 %v605_v40, %v602_v42  ;;  %v325_v50 = vadd.f32 %v324_v47, %v87_v23  ;;  %v512_v51 = vadd.f32 %v511_v48, %v92_v22  ;;  %v2408_v43 = vpop.permute.xlu0 %151  ;;  %v2410_v44 = vpop.permute.xlu1 %156 }
  0xe3   :  { %v603_v53 = vmax.f32 %v323_v45, 0.0  ;;  %v611_v54 = vmax.f32 %v517_v46, 0.0 }
  0xe4   :  { %v604_v56 = vmax.f32 %v325_v50, 0.0  ;;  %v608_v57 = vmax.f32 %v512_v51, 0.0  ;;  %v328_v58 = vpop.f32.mrb[4].mxu0  ;;  %v1788_v59 = vpop.f32.mrb[4].mxu1  ;;  %1899 = vmatpush1.bf16.msra.mxu0 %v1898_v49 }
  0xe5   :  { %v1859_v60 = vpack.c.bf16 %v603_v53, %v600_v52  ;;  %v527_v61 = vadd.f32 %v1788_v59, %v2381_v26  ;;  %v330_v62 = vpop.f32.mrb[5].mxu0  ;;  %v521_v63 = vpop.f32.mrb[5].mxu1  ;;  %1900 = vmatprep.subr.bf16.mxu0 %v2000_v17  ;;  %v329_v5 = vadd.f32 %v328_v58, %v92_v22 }
  0xe6   :  { %v1857_v0 = vpack.c.bf16 %v604_v56, %v601_v55  ;;  %v1901_v1 = vpack.c.bf16 %v611_v54, %v608_v57  ;;  %v522_v2 = vadd.f32 %v521_v63, %v2379_v25  ;;  %v331_v7 = vadd.f32 %v330_v62, %v92_v22 }
  0xe7   :  { %v617_v6 = vmax.f32 %v527_v61, 0.0  ;;  %v606_v20 = vmax.f32 %v329_v5, 0.0 }
  0xe8   :  { %v614_v8 = vmax.f32 %v522_v2, 0.0  ;;  %v334_v10 = vpop.f32.mrb[6].mxu0  ;;  %v1791_v11 = vpop.f32.mrb[6].mxu1  ;;  %1858 = vmatprep.subr.bf16.mxu1 %v1857_v0  ;;  %1902 = vmatpush1.bf16.msra.mxu0 %v1901_v1  ;;  %v607_v23 = vmax.f32 %v331_v7, 0.0 }
  0xe9   :  { %v335_v12 = vadd.f32 %v334_v10, %v97_v24  ;;  %v537_v13 = vadd.f32 %v1791_v11, %v2385_v28  ;;  %v336_v14 = vpop.f32.mrb[7].mxu0  ;;  %v531_v15 = vpop.f32.mrb[7].mxu1  ;;  %1860 = vmatpush1.bf16.msra.mxu1 %v1859_v60  ;;  %1903 = vmatprep.subr.bf16.mxu0 %v2000_v17 }
  0xea   :  { %v1904_v16 = vpack.c.bf16 %v617_v6, %v614_v8  ;;  %v337_v18 = vadd.f32 %v336_v14, %v97_v24  ;;  %v532_v19 = vadd.f32 %v531_v15, %v2383_v27  ;;  %v2422_v10 = vpop.permute.xlu0 %161  ;;  %v2424_v11 = vpop.permute.xlu1 %166 }
  0xeb   :  { %v609_v21 = vmax.f32 %v335_v12, 0.0  ;;  %v623_v22 = vmax.f32 %v537_v13, 0.0 }
  0xec   :  { %v610_v31 = vmax.f32 %v337_v18, 0.0  ;;  %v620_v32 = vmax.f32 %v532_v19, 0.0  ;;  %v340_v33 = vpop.f32.mrb[8].mxu0  ;;  %v1794_v34 = vpop.f32.mrb[8].mxu1  ;;  %1905 = vmatpush1.bf16.msra.mxu0 %v1904_v16 }
  0xed   :  { %v1863_v35 = vpack.c.bf16 %v609_v21, %v606_v20  ;;  %v547_v36 = vadd.f32 %v1794_v34, %v2389_v30  ;;  %v342_v39 = vpop.f32.mrb[9].mxu0  ;;  %v541_v40 = vpop.f32.mrb[9].mxu1  ;;  %1906 = vmatprep.subr.bf16.mxu0 %v2000_v17  ;;  %v341_v45 = vadd.f32 %v340_v33, %v2379_v25 }
  0xee   :  { %v1861_v41 = vpack.c.bf16 %v610_v31, %v607_v23  ;;  %v1907_v24 = vpack.c.bf16 %v623_v22, %v620_v32  ;;  %v542_v42 = vadd.f32 %v541_v40, %v2387_v29  ;;  %v343_v47 = vadd.f32 %v342_v39, %v2379_v25 }
  0xef   :  { %v629_v46 = vmax.f32 %v547_v36, 0.0  ;;  %v612_v25 = vmax.f32 %v341_v45, 0.0 }
  0xf0   :  { %v626_v48 = vmax.f32 %v542_v42, 0.0  ;;  %v346_v49 = vpop.f32.mrb[10].mxu0  ;;  %v1797_v50 = vpop.f32.mrb[10].mxu1  ;;  %1862 = vmatprep.subr.bf16.mxu1 %v1861_v41  ;;  %1908 = vmatpush1.bf16.msra.mxu0 %v1907_v24  ;;  %v613_v60 = vmax.f32 %v343_v47, 0.0 }
  0xf1   :  { %v347_v51 = vadd.f32 %v346_v49, %v2381_v26  ;;  %v557_v52 = vadd.f32 %v1797_v50, %v2393_v38  ;;  %v348_v53 = vpop.f32.mrb[11].mxu0  ;;  %v551_v54 = vpop.f32.mrb[11].mxu1  ;;  %1864 = vmatpush1.bf16.msra.mxu1 %v1863_v35  ;;  %1909 = vmatprep.subr.bf16.mxu0 %v2000_v17 }
  0xf2   :  { %v1910_v55 = vpack.c.bf16 %v629_v46, %v626_v48  ;;  %v349_v56 = vadd.f32 %v348_v53, %v2381_v26  ;;  %v552_v57 = vadd.f32 %v551_v54, %v2391_v37  ;;  %v2436_v49 = vpop.permute.xlu0 %171  ;;  %v2438_v50 = vpop.permute.xlu1 %176 }
  0xf3   :  { %v615_v58 = vmax.f32 %v347_v51, 0.0  ;;  %v635_v59 = vmax.f32 %v557_v52, 0.0 }
  0xf4   :  { %v616_v61 = vmax.f32 %v349_v56, 0.0  ;;  %v632_v62 = vmax.f32 %v552_v57, 0.0  ;;  %v352_v63 = vpop.f32.mrb[12].mxu0  ;;  %v1800_v0 = vpop.f32.mrb[12].mxu1  ;;  %1911 = vmatpush1.bf16.msra.mxu0 %v1910_v55 }
  0xf5   :  { %v1867_v1 = vpack.c.bf16 %v615_v58, %v612_v25  ;;  %v567_v2 = vadd.f32 %v1800_v0, %v2400_v4  ;;  %v354_v5 = vpop.f32.mrb[13].mxu0  ;;  %v561_v6 = vpop.f32.mrb[13].mxu1  ;;  %1912 = vmatprep.subr.bf16.mxu0 %v2000_v17  ;;  %v353_v12 = vadd.f32 %v352_v63, %v2383_v27 }
  0xf6   :  { %v1865_v7 = vpack.c.bf16 %v616_v61, %v613_v60  ;;  %v1913_v26 = vpack.c.bf16 %v635_v59, %v632_v62  ;;  %v562_v8 = vadd.f32 %v561_v6, %v2398_v3  ;;  %v355_v14 = vadd.f32 %v354_v5, %v2383_v27 }
  0xf7   :  { %v641_v13 = vmax.f32 %v567_v2, 0.0  ;;  %v618_v27 = vmax.f32 %v353_v12, 0.0 }
  0xf8   :  { %v638_v15 = vmax.f32 %v562_v8, 0.0  ;;  %v358_v16 = vpop.f32.mrb[14].mxu0  ;;  %v1803_v18 = vpop.f32.mrb[14].mxu1  ;;  %1866 = vmatprep.subr.bf16.mxu1 %v1865_v7  ;;  %1914 = vmatpush1.bf16.msra.mxu0 %v1913_v26  ;;  %v619_v35 = vmax.f32 %v355_v14, 0.0 }
  0xf9   :  { %v359_v19 = vadd.f32 %v358_v16, %v2385_v28  ;;  %v577_v20 = vadd.f32 %v1803_v18, %v2410_v44  ;;  %v360_v21 = vpop.f32.mrb[15].mxu0  ;;  %v571_v22 = vpop.f32.mrb[15].mxu1  ;;  %1868 = vmatpush1.bf16.msra.mxu1 %v1867_v1  ;;  %1915 = vmatprep.subr.bf16.mxu0 %v2000_v17 }
  0xfa   :  { %v1916_v23 = vpack.c.bf16 %v641_v13, %v638_v15  ;;  %v361_v31 = vadd.f32 %v360_v21, %v2385_v28  ;;  %v572_v32 = vadd.f32 %v571_v22, %v2408_v43  ;;  %v2453_v15 = vld [vmem:[%s2983_s3] sm:$0xff] }
  0xfb   :  { %v621_v33 = vmax.f32 %v359_v19, 0.0  ;;  %v647_v34 = vmax.f32 %v577_v20, 0.0  ;;  %v2459_v19 = vld [vmem:[%s2983_s3 + $0x18] sm:$0xff] }
  0xfc   :  { %v622_v36 = vmax.f32 %v361_v31, 0.0  ;;  %v644_v39 = vmax.f32 %v572_v32, 0.0  ;;  %v364_v40 = vpop.f32.mrb[16].mxu0  ;;  %v1806_v41 = vpop.f32.mrb[16].mxu1  ;;  %1917 = vmatpush1.bf16.msra.mxu0 %v1916_v23  ;;  %v2468_v32 = vld [vmem:[%s2983_s3 + $0x10] sm:$0xff] }
  0xfd   :  { %v1871_v24 = vpack.c.bf16 %v621_v33, %v618_v27  ;;  %v587_v42 = vadd.f32 %v1806_v41, %v2424_v11  ;;  %v366_v45 = vpop.f32.mrb[17].mxu0  ;;  %v581_v46 = vpop.f32.mrb[17].mxu1  ;;  %1918 = vmatprep.subr.bf16.mxu0 %v2000_v17  ;;  %v365_v51 = vadd.f32 %v364_v40, %v2387_v29  ;;  %v2483_v40 = vld [vmem:[%s2983_s3 + $0x20] sm:$0xff] }
  0xfe   :  { %v1869_v47 = vpack.c.bf16 %v622_v36, %v619_v35  ;;  %v1919_v28 = vpack.c.bf16 %v647_v34, %v644_v39  ;;  %v582_v48 = vadd.f32 %v581_v46, %v2422_v10  ;;  %v367_v53 = vadd.f32 %v366_v45, %v2387_v29 }
  0xff   :  { %v653_v52 = vmax.f32 %v587_v42, 0.0  ;;  %v624_v29 = vmax.f32 %v365_v51, 0.0  ;;  %v2489_v42 = vld [vmem:[%s2983_s3 + $0x38] sm:$0xff]  ;;  %v2498_v51 = vld [vmem:[%s2983_s3 + $0x30] sm:$0xff] }
 0x100   :  { %v650_v54 = vmax.f32 %v582_v48, 0.0  ;;  %v370_v55 = vpop.f32.mrb[18].mxu0  ;;  %v1809_v56 = vpop.f32.mrb[18].mxu1  ;;  %1870 = vmatprep.subr.bf16.mxu1 %v1869_v47  ;;  %1920 = vmatpush1.bf16.msra.mxu0 %v1919_v28  ;;  %v625_v1 = vmax.f32 %v367_v53, 0.0 }
 0x101   :  { %v371_v57 = vadd.f32 %v370_v55, %v2389_v30  ;;  %v597_v25 = vadd.f32 %v1809_v56, %v2438_v50  ;;  %v372_v58 = vpop.f32.mrb[19].mxu0  ;;  %v591_v59 = vpop.f32.mrb[19].mxu1  ;;  %1872 = vmatpush1.bf16.msra.mxu1 %v1871_v24  ;;  %1921 = vmatprep.subr.bf16.mxu0 %v2000_v17 }
 0x102   :  { %v1922_v60 = vpack.c.bf16 %v653_v52, %v650_v54  ;;  %v373_v61 = vadd.f32 %v372_v58, %v2389_v30  ;;  %v592_v62 = vadd.f32 %v591_v59, %v2436_v49 }
 0x103   :  { %v627_v63 = vmax.f32 %v371_v57, 0.0  ;;  %v659_v0 = vmax.f32 %v597_v25, 0.0  ;;  %v2513_v25 = vld [vmem:[%s2983_s3 + $0x40] sm:$0xff] }
 0x104   :  { %v628_v2 = vmax.f32 %v373_v61, 0.0  ;;  %v656_v5 = vmax.f32 %v592_v62, 0.0  ;;  %v376_v6 = vpop.f32.mrb[20].mxu0  ;;  %1923 = vmatpush1.bf16.msra.mxu0 %v1922_v60  ;;  %v2519_v60 = vld [vmem:[%s2983_s3 + $0x58] sm:$0xff] }
 0x105   :  { %v1875_v7 = vpack.c.bf16 %v627_v63, %v624_v29  ;;  %v378_v26 = vpop.f32.mrb[21].mxu0  ;;  %1924 = vmatprep.subr.bf16.mxu0 %v2000_v17  ;;  %v377_v13 = vadd.f32 %v376_v6, %v2391_v37 }
 0x106   :  { %v1873_v8 = vpack.c.bf16 %v628_v2, %v625_v1  ;;  %v1925_v12 = vpack.c.bf16 %v659_v0, %v656_v5  ;;  %v379_v30 = vadd.f32 %v378_v26, %v2391_v37  ;;  %v2528_v1 = vld [vmem:[%s2983_s3 + $0x50] sm:$0xff] }
 0x107   :  { %v630_v37 = vmax.f32 %v377_v13, 0.0 }
 0x108   :  { %v382_v14 = vpop.f32.mrb[22].mxu0  ;;  %1874 = vmatprep.subr.bf16.mxu1 %v1873_v8  ;;  %1926 = vmatpush1.bf16.msra.mxu0 %v1925_v12  ;;  %v631_v22 = vmax.f32 %v379_v30, 0.0  ;;  %v672_v12 = vld [vmem:[%s2983_s3 + $0x60] sm:$0xff] }
 0x109   :  { %v383_v16 = vadd.f32 %v382_v14, %v2393_v38  ;;  %v384_v18 = vpop.f32.mrb[23].mxu0  ;;  %1876 = vmatpush1.bf16.msra.mxu1 %v1875_v7  ;;  %v675_v14 = vld [vmem:[%s2983_s3 + $0x78] sm:$0xff] }
 0x10a   :  { %v385_v20 = vadd.f32 %v384_v18, %v2393_v38  ;;  %v2473_v38 = vld [vmem:[%s2983_s3 + $0x28] sm:$0xff] }
 0x10b   :  { %v633_v21 = vmax.f32 %v383_v16, 0.0  ;;  %1003 = vmatmul.mubr.f32.vlgmr.msra.gmra.mrb[40].mxu0 %v2453_v15 }
 0x10c   :  { %v634_v23 = vmax.f32 %v385_v20, 0.0  ;;  %v388_v31 = vpop.f32.mrb[24].mxu0  ;;  %1705 = vmatprep.mubr.msk.f32.mxu0 %vm782_vm4, %v2459_v19 }
 0x10d   :  { %v1879_v27 = vpack.c.bf16 %v633_v21, %v630_v37  ;;  %v390_v33 = vpop.f32.mrb[25].mxu0  ;;  %v389_v35 = vadd.f32 %v388_v31, %v2398_v3 }
 0x10e   :  { %v1877_v34 = vpack.c.bf16 %v634_v23, %v631_v22  ;;  %v391_v36 = vadd.f32 %v390_v33, %v2398_v3  ;;  %v674_v22 = vld [vmem:[%s2983_s3 + $0x70] sm:$0xff] }
 0x10f   :  { %1008 = vmatmul.mubr.f32.gmra.mrb[42].mxu0 %v2468_v32  ;;  %v636_v45 = vmax.f32 %v389_v35, 0.0 }
 0x110   :  { %v394_v39 = vpop.f32.mrb[26].mxu0  ;;  %1878 = vmatprep.subr.bf16.mxu1 %v1877_v34  ;;  %1706 = vmatprep.mubr.msk.f32.mxu0 %vm782_vm4, %v2473_v38  ;;  %v637_v47 = vmax.f32 %v391_v36, 0.0  ;;  %v676_v36 = vld [vmem:[%s2983_s3 + $0x80] sm:$0xff] }
 0x111   :  { %v395_v41 = vadd.f32 %v394_v39, %v2400_v4  ;;  %v396_v24 = vpop.f32.mrb[27].mxu0  ;;  %1880 = vmatpush1.bf16.msra.mxu1 %v1879_v27  ;;  %v677_v27 = vld [vmem:[%s2983_s3 + $0x88] sm:$0xff] }
 0x112   :  { %v397_v3 = vadd.f32 %v396_v24, %v2400_v4  ;;  %v2503_v4 = vld [vmem:[%s2983_s3 + $0x48] sm:$0xff]  ;;  %v679_v24 = vld [vmem:[%s2983_s3 + $0x98] sm:$0xff] }
 0x113   :  { %v639_v46 = vmax.f32 %v395_v41, 0.0  ;;  %1013 = vmatmul.mubr.f32.gmra.mrb[44].mxu0 %v2483_v40 }
 0x114   :  { %v640_v28 = vmax.f32 %v397_v3, 0.0  ;;  %v400_v48 = vpop.f32.mrb[28].mxu0  ;;  %1707 = vmatprep.mubr.msk.f32.mxu0 %vm782_vm4, %v2489_v42 }
 0x115   :  { %v1883_v52 = vpack.c.bf16 %v639_v46, %v636_v45  ;;  %v402_v53 = vpop.f32.mrb[29].mxu0  ;;  %v401_v55 = vadd.f32 %v400_v48, %v2408_v43 }
 0x116   :  { %v1881_v54 = vpack.c.bf16 %v640_v28, %v637_v47  ;;  %v403_v56 = vadd.f32 %v402_v53, %v2408_v43  ;;  %v678_v28 = vld [vmem:[%s2983_s3 + $0x90] sm:$0xff] }
 0x117   :  { %1018 = vmatmul.mubr.f32.gmra.mrb[46].mxu0 %v2498_v51  ;;  %v642_v61 = vmax.f32 %v401_v55, 0.0 }
 0x118   :  { %v406_v57 = vpop.f32.mrb[30].mxu0  ;;  %1882 = vmatprep.subr.bf16.mxu1 %v1881_v54  ;;  %1708 = vmatprep.mubr.msk.f32.mxu0 %vm782_vm4, %v2503_v4  ;;  %v643_v29 = vmax.f32 %v403_v56, 0.0 }
 0x119   :  { %v407_v58 = vadd.f32 %v406_v57, %v2410_v44  ;;  %v408_v59 = vpop.f32.mrb[31].mxu0  ;;  %1884 = vmatpush1.bf16.msra.mxu1 %v1883_v52 }
 0x11a   :  { %v409_v43 = vadd.f32 %v408_v59, %v2410_v44  ;;  %v673_v44 = vld [vmem:[%s2983_s3 + $0x68] sm:$0xff] }
 0x11b   :  { %v645_v62 = vmax.f32 %v407_v58, 0.0  ;;  %1023 = vmatmul.mubr.f32.gmra.mrb[48].mxu0 %v2513_v25 }
 0x11c   :  { %v646_v63 = vmax.f32 %v409_v43, 0.0  ;;  %v412_v0 = vpop.f32.mrb[32].mxu0  ;;  %1709 = vmatprep.mubr.msk.f32.mxu0 %vm782_vm4, %v2519_v60 }
 0x11d   :  { %v1887_v2 = vpack.c.bf16 %v645_v62, %v642_v61  ;;  %v414_v5 = vpop.f32.mrb[33].mxu0  ;;  %v413_v7 = vadd.f32 %v412_v0, %v2422_v10 }
 0x11e   :  { %v1885_v6 = vpack.c.bf16 %v646_v63, %v643_v29  ;;  %v415_v26 = vadd.f32 %v414_v5, %v2422_v10 }
 0x11f   :  { %1028 = vmatmul.mubr.f32.gmra.mrb[50].mxu0 %v2528_v1  ;;  %v648_v18 = vmax.f32 %v413_v7, 0.0 }
 0x120   :  { %v418_v8 = vpop.f32.mrb[34].mxu0  ;;  %1886 = vmatprep.subr.bf16.mxu1 %v1885_v6  ;;  %1710 = vmatprep.mubr.msk.f32.mxu0 %vm782_vm4, %v673_v44  ;;  %v649_v20 = vmax.f32 %v415_v26, 0.0 }
 0x121   :  { %v419_v13 = vadd.f32 %v418_v8, %v2424_v11  ;;  %v420_v30 = vpop.f32.mrb[35].mxu0  ;;  %1888 = vmatpush1.bf16.msra.mxu1 %v1887_v2 }
 0x122   :  { %v421_v16 = vadd.f32 %v420_v30, %v2424_v11 }
 0x123   :  { %v651_v10 = vmax.f32 %v419_v13, 0.0  ;;  %1033 = vmatmul.mubr.f32.gmra.mrb[52].mxu0 %v672_v12 }
 0x124   :  { %v652_v37 = vmax.f32 %v421_v16, 0.0  ;;  %v424_v21 = vpop.f32.mrb[36].mxu0  ;;  %1711 = vmatprep.mubr.msk.f32.mxu0 %vm782_vm4, %v675_v14 }
 0x125   :  { %v1891_v23 = vpack.c.bf16 %v651_v10, %v648_v18  ;;  %v426_v31 = vpop.f32.mrb[37].mxu0  ;;  %v425_v11 = vadd.f32 %v424_v21, %v2436_v49 }
 0x126   :  { %v1889_v33 = vpack.c.bf16 %v652_v37, %v649_v20  ;;  %v427_v34 = vadd.f32 %v426_v31, %v2436_v49 }
 0x127   :  { %1038 = vmatmul.mubr.f32.gmra.mrb[54].mxu0 %v674_v22  ;;  %v654_v45 = vmax.f32 %v425_v11, 0.0 }
 0x128   :  { %v430_v35 = vpop.f32.mrb[38].mxu0  ;;  %1890 = vmatprep.subr.bf16.mxu1 %v1889_v33  ;;  %1712 = vmatprep.mubr.msk.f32.mxu0 %vm782_vm4, %v677_v27  ;;  %v655_v46 = vmax.f32 %v427_v34, 0.0 }
 0x129   :  { %v431_v39 = vadd.f32 %v430_v35, %v2438_v50  ;;  %v432_v41 = vpop.f32.mrb[39].mxu0  ;;  %1892 = vmatpush1.bf16.msra.mxu1 %v1891_v23 }
 0x12a   :  { %v433_v3 = vadd.f32 %v432_v41, %v2438_v50  ;;  %v2588_v50 = vpop.permute.xlu0 %692 }
 0x12b   :  { %v657_v49 = vmax.f32 %v431_v39, 0.0  ;;  %1043 = vmatmul.mubr.f32.gmra.mrb[56].mxu0 %v676_v36 }
 0x12c   :  { %v658_v47 = vmax.f32 %v433_v3, 0.0  ;;  %1713 = vmatprep.mubr.msk.f32.mxu0 %vm782_vm4, %v679_v24 }
 0x12d   :  { %v1895_v48 = vpack.c.bf16 %v657_v49, %v654_v45 }
 0x12e   :  { %v1893_v52 = vpack.c.bf16 %v658_v47, %v655_v46 }
 0x12f   :  { %1048 = vmatmul.mubr.f32.gmra.mrb[58].mxu0 %v678_v28 }
 0x130   :  { %1894 = vmatprep.subr.bf16.mxu1 %v1893_v52 }
 0x131   :  { %1896 = vmatpush1.bf16.msra.mxu1 %v1895_v48 }
 0x134   :  { %878 = vmatmul.mubr.f32.vlgmr.msra.gmra.mrb[20].mxu1 %v2453_v15  ;;  %v2590_v15 = vpop.permute.xlu1 %697 }
 0x135   :  { %1695 = vmatprep.mubr.msk.f32.mxu1 %vm782_vm4, %v2459_v19  ;;  %v740_v19 = vlaneseq }
 0x138   :  { %884 = vmatmul.mubr.f32.gmra.mrb[22].mxu1 %v2468_v32  ;;  %v2592_v32 = vpop.permute.xlu0 %702 }
 0x139   :  { %1696 = vmatprep.mubr.msk.f32.mxu1 %vm782_vm4, %v2473_v38  ;;  %v741_v38 = vshrl.u32 %v740_v19, 7 }
 0x13c   :  { %890 = vmatmul.mubr.f32.gmra.mrb[24].mxu1 %v2483_v40  ;;  %v2594_v40 = vpop.permute.xlu1 %707 }
 0x13d   :  { %1697 = vmatprep.mubr.msk.f32.mxu1 %vm782_vm4, %v2489_v42  ;;  %v2596_v42 = vsub.s32 0, %v741_v38 }
 0x140   :  { %896 = vmatmul.mubr.f32.gmra.mrb[26].mxu1 %v2498_v51  ;;  %v2598_v51 = vpop.permute.xlu0 %1065  ;;  %v2600_v53 = vpop.permute.xlu1 %1070 }
 0x141   :  { %1698 = vmatprep.mubr.msk.f32.mxu1 %vm782_vm4, %v2503_v4  ;;  %v2605_v4 = vld [vmem:[%s2980_s0 + $0x10] sm:$0xff] }
 0x142   :  { %v2609_v54 = vrot.slane %v2605_v4, %v2596_v42 }
 0x144   :  { %902 = vmatmul.mubr.f32.gmra.mrb[28].mxu1 %v2513_v25  ;;  %v2611_v55 = vpop.permute.xlu0 %712  ;;  %v754_v56 = vmul.f32 %v2609_v54, %v2588_v50  ;;  %v2615_v57 = vpop.permute.xlu1 %717  ;;  %v760_v2 = vmul.f32 %v2609_v54, %v2592_v32  ;;  %v763_v13 = vmul.f32 %v2609_v54, %v2594_v40 }
 0x145   :  { %1699 = vmatprep.mubr.msk.f32.mxu1 %vm782_vm4, %v2519_v60  ;;  %v757_v60 = vmul.f32 %v2609_v54, %v2590_v15  ;;  %v766_v37 = vmul.f32 %v2609_v54, %v2611_v55  ;;  %v769_v35 = vmul.f32 %v2609_v54, %v2615_v57 }
 0x148   :  { %908 = vmatmul.mubr.f32.gmra.mrb[30].mxu1 %v2528_v1  ;;  %v2619_v43 = vpop.permute.xlu0 %1075  ;;  %v2622_v0 = vpop.permute.xlu1 %1080 }
 0x149   :  { %1700 = vmatprep.mubr.msk.f32.mxu1 %vm782_vm4, %v673_v44 }
 0x14c   :  { %914 = vmatmul.mubr.f32.gmra.mrb[32].mxu1 %v672_v12  ;;  %v2627_v8 = vpop.permute.xlu0 %722  ;;  %v2633_v30 = vpop.permute.xlu1 %727 }
 0x14d   :  { %1701 = vmatprep.mubr.msk.f32.mxu1 %vm782_vm4, %v675_v14  ;;  %v772_v49 = vmul.f32 %v2609_v54, %v2627_v8 }
 0x150   :  { %920 = vmatmul.mubr.f32.gmra.mrb[34].mxu1 %v674_v22  ;;  %v2639_v21 = vpop.permute.xlu0 %1085  ;;  %v2641_v11 = vpop.permute.xlu1 %1090 }
 0x151   :  { %1702 = vmatprep.mubr.msk.f32.mxu1 %vm782_vm4, %v677_v27 }
 0x154   :  { %926 = vmatmul.mubr.f32.gmra.mrb[36].mxu1 %v676_v36  ;;  %v2648_v3 = vpop.permute.xlu0 %732  ;;  %v2653_v46 = vpop.permute.xlu1 %737 }
 0x155   :  { %1703 = vmatprep.mubr.msk.f32.mxu1 %vm782_vm4, %v679_v24 }
 0x158   :  { %932 = vmatmul.mubr.f32.gmra.mrb[38].mxu1 %v678_v28 }
 0x159   :  { %1303 = vmatprep.mubr.f32.mxu1 %v1998_v9 }
 0x1de   :  { %v1004_v25 = vpop.f32.mrb[40].mxu0 }
 0x1df   :  { %v1005_v58 = vadd.f32 %v1004_v25, %v754_v56  ;;  %v1006_v59 = vpop.f32.mrb[41].mxu0  ;;  %v775_v56 = vmul.f32 %v2609_v54, %v2633_v30  ;;  %v2659_v25 = vpop.permute.xlu0 %1095 }
 0x1e1   :  { %v1115_v62 = vadd.f32 %v2598_v51, %v1005_v58 }
 0x1e2   :  { %v1009_v61 = vpop.f32.mrb[42].mxu0 }
 0x1e3   :  { %v1010_v29 = vadd.f32 %v1009_v61, %v757_v60  ;;  %v1011_v63 = vpop.f32.mrb[43].mxu0  ;;  %v1145_v44 = vmax.f32 %v1115_v62, 0.0  ;;  %v2662_v62 = vpop.permute.xlu1 %1100 }
 0x1e4   :  { %v778_v63 = vmul.f32 %v2609_v54, %v2648_v3 }
 0x1e5   :  { %v1118_v1 = vadd.f32 %v2600_v53, %v1010_v29 }
 0x1e6   :  { %v1014_v5 = vpop.f32.mrb[44].mxu0 }
 0x1e7   :  { %v1148_v6 = vmax.f32 %v1118_v1, 0.0  ;;  %v1015_v7 = vadd.f32 %v1014_v5, %v760_v2  ;;  %v1016_v26 = vpop.f32.mrb[45].mxu0 }
 0x1e8   :  { %v781_v26 = vmul.f32 %v2609_v54, %v2653_v46 }
 0x1e9   :  { %v2629_v12 = vpack.c.bf16 %v1148_v6, %v1145_v44  ;;  %v1121_v16 = vadd.f32 %v2619_v43, %v1015_v7 }
 0x1ea   :  { %v1019_v14 = vpop.f32.mrb[46].mxu0 }
 0x1eb   :  { %v1020_v18 = vadd.f32 %v1019_v14, %v763_v13  ;;  %v1021_v10 = vpop.f32.mrb[47].mxu0  ;;  %v1151_v23 = vmax.f32 %v1121_v16, 0.0  ;;  %v2674_v13 = vld [vmem:[%s2980_s0] sm:$0xff]  ;;  %v2680_v16 = vpop.permute.xlu0 %1105 }
 0x1ec   :  { %v2678_v14 = vrot.slane %v2674_v13, %v2596_v42  ;;  %v2685_v10 = vld [vmem:[%s2980_s0 + $0x8] sm:$0xff]  ;;  %vm1469_vm7 = vcmp.ge.f32.partialorder %v2674_v13, 0.0  ;;  %vm1472_vm8 = vcmp.lt.f32.partialorder %v2674_v13, 0.2  ;;  %vm1502_vm11 = vcmp.ge.f32.partialorder %v2674_v13, 0.2 }
 0x1ed   :  { %v1124_v20 = vadd.f32 %v2622_v0, %v1020_v18  ;;  %vm1470_vm9 = vcmp.ge.f32.partialorder %v2685_v10, 0.0  ;;  %vm1473_vm10 = vcmp.lt.f32.partialorder %v2685_v10, 0.2  ;;  %vm1505_vm12 = vcmp.lt.f32.partialorder %v2674_v13, 0.4  ;;  %vm1475_vm13 = vmand %vm1469_vm7, %vm1472_vm8 }
 0x1ee   :  { %v1024_v22 = vpop.f32.mrb[48].mxu0  ;;  %vm1503_vm14 = vcmp.ge.f32.partialorder %v2685_v10, 0.2  ;;  %vm1506_vm15 = vcmp.lt.f32.partialorder %v2685_v10, 0.4  ;;  %vm2817_vm0 = vmand %vm1470_vm9, %vm1473_vm10 }
 0x1ef   :  { %v1154_v31 = vmax.f32 %v1124_v20, 0.0  ;;  %v1025_v27 = vadd.f32 %v1024_v22, %v766_v37  ;;  %v1026_v33 = vpop.f32.mrb[49].mxu0  ;;  %v2689_v20 = vrot.slane %v2685_v10, %v2596_v42  ;;  %vm1535_vm1 = vcmp.ge.f32.partialorder %v2674_v13, 0.4  ;;  %vm1508_vm3 = vmand %vm1502_vm11, %vm1505_vm12 }
 0x1f0   :  { %v752_v33 = vmul.f32 %v2678_v14, %v2588_v50  ;;  %vm1538_vm2 = vcmp.lt.f32.partialorder %v2674_v13, 0.6  ;;  %vm1536_vm4 = vcmp.ge.f32.partialorder %v2685_v10, 0.4  ;;  %vm1568_vm9 = vcmp.ge.f32.partialorder %v2674_v13, 0.6 }
 0x1f1   :  { %v2643_v34 = vpack.c.bf16 %v1154_v31, %v1151_v23  ;;  %v1127_v39 = vadd.f32 %v2639_v21, %v1025_v27  ;;  %v2692_v31 = vpop.permute.xlu1 %1110  ;;  %vm1541_vm7 = vmand %vm1535_vm1, %vm1538_vm2  ;;  %vm1571_vm10 = vcmp.lt.f32.partialorder %v2674_v13, 0.8  ;;  %vm1569_vm11 = vcmp.ge.f32.partialorder %v2685_v10, 0.6 }
 0x1f2   :  { %v1029_v36 = vpop.f32.mrb[50].mxu0  ;;  %vm1572_vm12 = vcmp.lt.f32.partialorder %v2685_v10, 0.8  ;;  %vm1602_vm1 = vcmp.ge.f32.partialorder %v2685_v10, 0.8  ;;  %vm1605_vm2 = vcmp.le.f32.partialorder %v2685_v10, 1.0 }
 0x1f3   :  { %v1030_v41 = vadd.f32 %v1029_v36, %v769_v35  ;;  %v1031_v24 = vpop.f32.mrb[51].mxu0  ;;  %v1157_v28 = vmax.f32 %v1127_v39, 0.0 }
 0x1f5   :  { %v1130_v45 = vadd.f32 %v2641_v11, %v1030_v41  ;;  %v753_v41 = vmul.f32 %v2689_v20, %v2588_v50 }
 0x1f6   :  { %v1034_v47 = vpop.f32.mrb[52].mxu0 }
 0x1f7   :  { %v1160_v48 = vmax.f32 %v1130_v45, 0.0  ;;  %v1035_v52 = vadd.f32 %v1034_v47, %v772_v49  ;;  %v1036_v19 = vpop.f32.mrb[53].mxu0 }
 0x1f9   :  { %v2655_v38 = vpack.c.bf16 %v1160_v48, %v1157_v28  ;;  %v1133_v59 = vadd.f32 %v2659_v25, %v1035_v52  ;;  %v755_v28 = vmul.f32 %v2678_v14, %v2590_v15  ;;  %v756_v52 = vmul.f32 %v2689_v20, %v2590_v15 }
 0x1fa   :  { %v1039_v58 = vpop.f32.mrb[54].mxu0 }
 0x1fb   :  { %v1040_v60 = vadd.f32 %v1039_v58, %v775_v56  ;;  %v1041_v61 = vpop.f32.mrb[55].mxu0  ;;  %v1163_v2 = vmax.f32 %v1133_v59, 0.0 }
 0x1fc   :  { %v758_v61 = vmul.f32 %v2678_v14, %v2592_v32 }
 0x1fd   :  { %v1136_v29 = vadd.f32 %v2662_v62, %v1040_v60 }
 0x1fe   :  { %v1044_v1 = vpop.f32.mrb[56].mxu0 }
 0x1ff   :  { %v1166_v5 = vmax.f32 %v1136_v29, 0.0  ;;  %v1045_v44 = vadd.f32 %v1044_v1, %v778_v63  ;;  %v1046_v6 = vpop.f32.mrb[57].mxu0  ;;  %v759_v1 = vmul.f32 %v2689_v20, %v2592_v32 }
 0x201   :  { %v2667_v7 = vpack.c.bf16 %v1166_v5, %v1163_v2  ;;  %v1139_v37 = vadd.f32 %v2680_v16, %v1045_v44 }
 0x202   :  { %v1049_v18 = vpop.f32.mrb[58].mxu0 }
 0x203   :  { %v1050_v22 = vadd.f32 %v1049_v18, %v781_v26  ;;  %v1051_v23 = vpop.f32.mrb[59].mxu0  ;;  %v1169_v35 = vmax.f32 %v1139_v37, 0.0  ;;  %v761_v37 = vmul.f32 %v2678_v14, %v2594_v40 }
 0x204   :  { %v762_v23 = vmul.f32 %v2689_v20, %v2594_v40  ;;  %v765_v40 = vmul.f32 %v2689_v20, %v2611_v55 }
 0x205   :  { %v1142_v27 = vadd.f32 %v2692_v31, %v1050_v22 }
 0x207   :  { %v1172_v36 = vmax.f32 %v1142_v27, 0.0  ;;  %v879_v39 = vpop.f32.mrb[20].mxu1 }
 0x208   :  { %v880_v24 = vadd.f32 %v879_v39, %v752_v33  ;;  %v881_v45 = vpop.f32.mrb[21].mxu1 }
 0x209   :  { %v2699_v49 = vpack.c.bf16 %v1172_v36, %v1169_v35  ;;  %v882_v47 = vadd.f32 %v881_v45, %v753_v41  ;;  %v764_v41 = vmul.f32 %v2678_v14, %v2611_v55 }
 0x20a   :  { %v1113_v19 = vadd.f32 %v2598_v51, %v880_v24 }
 0x20b   :  { %v885_v48 = vpop.f32.mrb[22].mxu1  ;;  %v1114_v59 = vadd.f32 %v2598_v51, %v882_v47 }
 0x20c   :  { %v886_v56 = vadd.f32 %v885_v48, %v755_v28  ;;  %v887_v58 = vpop.f32.mrb[23].mxu1  ;;  %v1143_v2 = vmax.f32 %v1113_v19, 0.0 }
 0x20d   :  { %v888_v60 = vadd.f32 %v887_v58, %v756_v52  ;;  %v1144_v6 = vmax.f32 %v1114_v59, 0.0  ;;  %v767_v59 = vmul.f32 %v2678_v14, %v2615_v57 }
 0x20e   :  { %v1116_v50 = vadd.f32 %v2600_v53, %v886_v56 }
 0x20f   :  { %v1117_v29 = vadd.f32 %v2600_v53, %v888_v60  ;;  %v891_v63 = vpop.f32.mrb[24].mxu1 }
 0x210   :  { %v1146_v15 = vmax.f32 %v1116_v50, 0.0  ;;  %v892_v5 = vadd.f32 %v891_v63, %v758_v61  ;;  %v893_v44 = vpop.f32.mrb[25].mxu1  ;;  %v768_v50 = vmul.f32 %v2689_v20, %v2615_v57  ;;  %v771_v57 = vmul.f32 %v2689_v20, %v2627_v8 }
 0x211   :  { %v1147_v26 = vmax.f32 %v1117_v29, 0.0  ;;  %v894_v18 = vadd.f32 %v893_v44, %v759_v1 }
 0x212   :  { %v1929_v51 = vpack.c.bf16 %v1146_v15, %v1143_v2  ;;  %v1119_v27 = vadd.f32 %v2619_v43, %v892_v5  ;;  %v770_v15 = vmul.f32 %v2678_v14, %v2627_v8 }
 0x213   :  { %v897_v22 = vpop.f32.mrb[26].mxu1  ;;  %v1927_v53 = vpack.c.bf16 %v1147_v26, %v1144_v6  ;;  %v1120_v35 = vadd.f32 %v2619_v43, %v894_v18 }
 0x214   :  { %v898_v33 = vadd.f32 %v897_v22, %v761_v37  ;;  %v899_v32 = vpop.f32.mrb[27].mxu1  ;;  %v1149_v47 = vmax.f32 %v1119_v27, 0.0 }
 0x215   :  { %v900_v36 = vadd.f32 %v899_v32, %v762_v23  ;;  %1928 = vmatprep.subr.bf16.mxu1 %v1927_v53  ;;  %v1150_v19 = vmax.f32 %v1120_v35, 0.0  ;;  %v773_v53 = vmul.f32 %v2678_v14, %v2633_v30 }
 0x216   :  { %v1122_v39 = vadd.f32 %v2622_v0, %v898_v33  ;;  %1930 = vmatpush1.bf16.msra.mxu1 %v1929_v51  ;;  %v774_v33 = vmul.f32 %v2689_v20, %v2633_v30  ;;  %v777_v30 = vmul.f32 %v2689_v20, %v2648_v3 }
 0x217   :  { %v1123_v24 = vadd.f32 %v2622_v0, %v900_v36  ;;  %v903_v45 = vpop.f32.mrb[28].mxu1 }
 0x218   :  { %v1152_v28 = vmax.f32 %v1122_v39, 0.0  ;;  %v904_v48 = vadd.f32 %v903_v45, %v764_v41  ;;  %v905_v52 = vpop.f32.mrb[29].mxu1 }
 0x219   :  { %v1153_v43 = vmax.f32 %v1123_v24, 0.0  ;;  %v906_v56 = vadd.f32 %v905_v52, %v765_v40  ;;  %v776_v24 = vmul.f32 %v2678_v14, %v2648_v3 }
 0x21a   :  { %v1933_v58 = vpack.c.bf16 %v1152_v28, %v1149_v47  ;;  %v1125_v61 = vadd.f32 %v2639_v21, %v904_v48 }
 0x21b   :  { %v909_v60 = vpop.f32.mrb[30].mxu1  ;;  %v1931_v0 = vpack.c.bf16 %v1153_v43, %v1150_v19  ;;  %v1126_v63 = vadd.f32 %v2639_v21, %v906_v56 }
 0x21c   :  { %v910_v29 = vadd.f32 %v909_v60, %v767_v59  ;;  %v911_v55 = vpop.f32.mrb[31].mxu1  ;;  %v1155_v6 = vmax.f32 %v1125_v61, 0.0  ;;  %v780_v60 = vmul.f32 %v2689_v20, %v2653_v46 }
 0x21d   :  { %v912_v1 = vadd.f32 %v911_v55, %v768_v50  ;;  %1932 = vmatprep.subr.bf16.mxu1 %v1931_v0  ;;  %v1156_v37 = vmax.f32 %v1126_v63, 0.0 }
 0x21e   :  { %v1128_v2 = vadd.f32 %v2641_v11, %v910_v29  ;;  %1934 = vmatpush1.bf16.msra.mxu1 %v1933_v58  ;;  %v779_v58 = vmul.f32 %v2678_v14, %v2653_v46 }
 0x21f   :  { %v1129_v5 = vadd.f32 %v2641_v11, %v912_v1  ;;  %v915_v44 = vpop.f32.mrb[32].mxu1 }
 0x220   :  { %v1158_v26 = vmax.f32 %v1128_v2, 0.0  ;;  %v916_v18 = vadd.f32 %v915_v44, %v770_v15  ;;  %v917_v51 = vpop.f32.mrb[33].mxu1 }
 0x221   :  { %v1159_v21 = vmax.f32 %v1129_v5, 0.0  ;;  %v918_v22 = vadd.f32 %v917_v51, %v771_v57  ;;  %v1173_v57 = vld [vmem:[%s2986_s6] sm:$0xff] }
 0x222   :  { %v1937_v23 = vpack.c.bf16 %v1158_v26, %v1155_v6  ;;  %v1131_v32 = vadd.f32 %v2659_v25, %v916_v18 }
 0x223   :  { %v921_v27 = vpop.f32.mrb[34].mxu1  ;;  %v1935_v11 = vpack.c.bf16 %v1159_v21, %v1156_v37  ;;  %v1132_v36 = vadd.f32 %v2659_v25, %v918_v22  ;;  %v1724_v21 = vsel %vm1475_vm13, 1.0, %v1998_v9  ;;  %vm2867_vm13 = vmand %vm1568_vm9, %vm1571_vm10 }
 0x224   :  { %v922_v35 = vadd.f32 %v921_v27, %v773_v53  ;;  %v923_v8 = vpop.f32.mrb[35].mxu1  ;;  %v1161_v47 = vmax.f32 %v1131_v32, 0.0 }
 0x225   :  { %v924_v39 = vadd.f32 %v923_v8, %v774_v33  ;;  %1936 = vmatprep.subr.bf16.mxu1 %v1935_v11  ;;  %v1162_v19 = vmax.f32 %v1132_v36, 0.0  ;;  %v1727_v11 = vsel %vm1508_vm3, 1.0, %v1998_v9  ;;  %v1725_v8 = vsel %vm2817_vm0, 1.0, %v1998_v9 }
 0x226   :  { %v1134_v41 = vadd.f32 %v2662_v62, %v922_v35  ;;  %1938 = vmatpush1.bf16.msra.mxu1 %v1937_v23  ;;  %vm1604_vm0 = vcmp.le.f32.partialorder %v2674_v13, 1.0 }
 0x227   :  { %v1135_v45 = vadd.f32 %v2662_v62, %v924_v39  ;;  %v927_v40 = vpop.f32.mrb[36].mxu1 }
 0x228   :  { %v1164_v28 = vmax.f32 %v1134_v41, 0.0  ;;  %v928_v48 = vadd.f32 %v927_v40, %v776_v24  ;;  %v929_v52 = vpop.f32.mrb[37].mxu1  ;;  %v1487_v41 = vrot.slane %v1724_v21, %v2596_v42 }
 0x229   :  { %v1165_v25 = vmax.f32 %v1135_v45, 0.0  ;;  %v930_v43 = vadd.f32 %v929_v52, %v777_v30  ;;  %v1730_v45 = vsel %vm1541_vm7, 1.0, %v1998_v9  ;;  %vm1504_vm7 = vcmp.ge.f32.partialorder %v2605_v4, 0.2 }
 0x22a   :  { %v1941_v56 = vpack.c.bf16 %v1164_v28, %v1161_v47  ;;  %v1137_v50 = vadd.f32 %v2680_v16, %v928_v48  ;;  %v1520_v47 = vrot.slane %v1727_v11, %v2596_v42 }
 0x22b   :  { %v933_v59 = vpop.f32.mrb[38].mxu1  ;;  %v1939_v62 = vpack.c.bf16 %v1165_v25, %v1162_v19  ;;  %v1138_v61 = vadd.f32 %v2680_v16, %v930_v43  ;;  %v1174_v16 = vld [vmem:[%s2986_s6 + $0x8] sm:$0xff]  ;;  %v1491_v19 = vrot.slane %v1725_v8, %v2596_v42 }
 0x22c   :  { %v934_v0 = vadd.f32 %v933_v59, %v779_v58  ;;  %v935_v3 = vpop.f32.mrb[39].mxu1  ;;  %v1167_v1 = vmax.f32 %v1137_v50, 0.0  ;;  %v1553_v59 = vrot.slane %v1730_v45, %v2596_v42 }
 0x22d   :  { %v936_v29 = vadd.f32 %v935_v3, %v780_v60  ;;  %1940 = vmatprep.subr.bf16.mxu1 %v1939_v62  ;;  %v1168_v15 = vmax.f32 %v1138_v61, 0.0 }
 0x22e   :  { %v1140_v55 = vadd.f32 %v2692_v31, %v934_v0  ;;  %1942 = vmatpush1.bf16.msra.mxu1 %v1941_v56 }
 0x22f   :  { %v1141_v63 = vadd.f32 %v2692_v31, %v936_v29  ;;  %v1175_v31 = vld [vmem:[%s2986_s6 + $0x10] sm:$0xff] }
 0x230   :  { %v1170_v2 = vmax.f32 %v1140_v55, 0.0 }
 0x231   :  { %v1171_v5 = vmax.f32 %v1141_v63, 0.0 }
 0x232   :  { %v1945_v44 = vpack.c.bf16 %v1170_v2, %v1167_v1  ;;  %v1733_v1 = vsel %vm2867_vm13, 1.0, %v1998_v9 }
 0x233   :  { %v1943_v46 = vpack.c.bf16 %v1171_v5, %v1168_v15 }
 0x235   :  { %1944 = vmatprep.subr.bf16.mxu1 %v1943_v46 }
 0x236   :  { %1946 = vmatpush1.bf16.msra.mxu1 %v1945_v44 }
 0x237   :  { %1947 = vmatprep.subr.bf16.mxu1 %v2000_v17 }
 0x239   :  { %1714 = vmatmul.mubr.msk.f32.vlgmr.msra.gmra.mrb[40].mxu1 %vm1223_vm5, %v1173_v57 }
 0x23a   :  { %1949 = vmatpush3.bf16.msra.mxu1 %v2629_v12  ;;  %1309 = vmatprep.mubr.f32.mxu1 %v1998_v9  ;;  %v1176_v12 = vld [vmem:[%s2986_s6 + $0x18] sm:$0xff] }
 0x23b   :  { %1950 = vmatprep.subr.bf16.mxu1 %v2000_v17 }
 0x23d   :  { %1715 = vmatmul.mubr.msk.f32.gmra.mrb[42].mxu1 %vm1223_vm5, %v1174_v16 }
 0x23e   :  { %1952 = vmatpush3.bf16.msra.mxu1 %v2643_v34  ;;  %1315 = vmatprep.mubr.f32.mxu1 %v1998_v9  ;;  %v1177_v34 = vld [vmem:[%s2986_s6 + $0x20] sm:$0xff]  ;;  %s2002_s6 = smov [#allocation2]  }
 0x23f   :  { %1953 = vmatprep.subr.bf16.mxu1 %v2000_v17  ;;  %s1643_s7 = sshll.u32 %s2002_s6, 4  ;;  %s1644_s7 = int_to_ptr.vmem [resolvable:$true] %s1643_s7 }
 0x240   :  { %s1973_s27 = scalar_lea.vmem %s1644_s7, 384  ;;  %p1978_p1 = scmp.lt.s32.totalorder %s1644_s7, %s1644_s7 }
 0x241   :  { %1716 = vmatmul.mubr.msk.f32.gmra.mrb[44].mxu1 %vm1223_vm5, %v1175_v31  ;;  %p1974_p0 = scmp.ne.s32.totalorder %s1644_s7, %s1973_s27  ;;  %p1979_p2 = scmp.lt.s32.totalorder %s1973_s27, %s1973_s27 }
 0x242   :  { %1955 = vmatpush3.bf16.msra.mxu1 %v2655_v38  ;;  %1321 = vmatprep.mubr.f32.mxu1 %v1998_v9  ;;  %v2803_v38 = vpop.permute.xlu1 %1190 }
 0x243   :  { %1956 = vmatprep.subr.bf16.mxu1 %v2000_v17  ;;  %v1211_v23 = vmul.f32 %v2803_v38, %v2678_v14  ;;  %v1212_v53 = vmul.f32 %v2803_v38, %v2689_v20  ;;  %p1980_p3 = por %p1979_p2, %p1978_p1 }
 0x245   :  { %1717 = vmatmul.mubr.msk.f32.gmra.mrb[46].mxu1 %vm1223_vm5, %v1176_v12  ;;  %p1981_p4 = pnand %p1980_p3, %p1974_p0 }
 0x246   :  { %1958 = vmatpush3.bf16.msra.mxu1 %v2667_v7  ;;  %1327 = vmatprep.mubr.f32.mxu1 %v1998_v9 }
 0x247   :  { %1959 = vmatprep.subr.bf16.mxu1 %v2000_v17  ;;  %v2801_v17 = vpop.permute.xlu0 %1185 }
 0x248   :  { %v1208_v26 = vmul.f32 %v2801_v17, %v2678_v14  ;;  %v1209_v51 = vmul.f32 %v2801_v17, %v2689_v20 }
 0x249   :  { %1718 = vmatmul.mubr.msk.f32.gmra.mrb[48].mxu1 %vm1223_vm5, %v1177_v34 }
 0x24a   :  { %1961 = vmatpush3.bf16.msra.mxu1 %v2699_v49  ;;  %1830 = vmatprep.mubr.msk.f32.mxu1 %vm2001_vm6, %v1998_v9  ;;  %v2815_v49 = vpop.permute.xlu1 %1200 }
 0x24b   :  { %v2809_v7 = vpop.permute.xlu0 %1195 }
 0x24c   :  { %v1214_v32 = vmul.f32 %v2809_v7, %v2678_v14  ;;  %v1215_v35 = vmul.f32 %v2809_v7, %v2689_v20 }
 0x24d   :  { %1831 = vmatmul.mubr.msk.f32.vlgmr.msra.gmra.mrb[50].mxu1 %vm1223_vm5, %v1173_v57 }
 0x24e   :  { %1833 = vmatprep.mubr.msk.f32.mxu1 %vm2001_vm6, %v1998_v9  ;;  %v2851_v39 = vpop.permute.xlu1 %1436 }
 0x24f   :  { %v2834_v27 = vpop.permute.xlu0 %1431 }
 0x251   :  { %1834 = vmatmul.mubr.msk.f32.gmra.mrb[52].mxu1 %vm1223_vm5, %v1174_v16 }
 0x252   :  { %1836 = vmatprep.mubr.msk.f32.mxu1 %vm2001_vm6, %v1998_v9  ;;  %v2888_v2 = vpop.permute.xlu1 %1441 }
 0x253   :  { %v2879_v62 = vpop.permute.xlu0 %1205 }
 0x255   :  { %1837 = vmatmul.mubr.msk.f32.gmra.mrb[54].mxu1 %vm1223_vm5, %v1175_v31 }
 0x256   :  { %1839 = vmatprep.mubr.msk.f32.mxu1 %vm2001_vm6, %v1998_v9 }
 0x259   :  { %1840 = vmatmul.mubr.msk.f32.gmra.mrb[56].mxu1 %vm1223_vm5, %v1176_v12  ;;  %v1217_v12 = vmul.f32 %v2815_v49, %v2678_v14 }
 0x25a   :  { %1842 = vmatprep.mubr.msk.f32.mxu1 %vm2001_vm6, %v1998_v9  ;;  %vm1509_vm6 = vmand %vm1503_vm14, %vm1506_vm15  ;;  %vm1601_vm15 = vcmp.ge.f32.partialorder %v2674_v13, 0.8 }
 0x25b   :  { %v1728_v36 = vsel %vm1509_vm6, 1.0, %v1998_v9  ;;  %vm2873_vm14 = vmand %vm1569_vm11, %vm1572_vm12  ;;  %vm1474_vm6 = vcmp.lt.f32.partialorder %v2605_v4, 0.2  ;;  %vm1537_vm11 = vcmp.ge.f32.partialorder %v2605_v4, 0.4 }
 0x25c   :  { %v1524_v43 = vrot.slane %v1728_v36, %v2596_v42  ;;  %v1734_v46 = vsel %vm2873_vm14, 1.0, %v1998_v9  ;;  %vm2897_vm3 = vmand %vm1601_vm15, %vm1604_vm0  ;;  %vm1540_vm12 = vcmp.lt.f32.partialorder %v2605_v4, 0.6  ;;  %vm1570_vm14 = vcmp.ge.f32.partialorder %v2605_v4, 0.6 }
 0x25d   :  { %1843 = vmatmul.mubr.msk.f32.gmra.mrb[58].mxu1 %vm1223_vm5, %v1177_v34  ;;  %vm1539_vm5 = vcmp.lt.f32.partialorder %v2685_v10, 0.6  ;;  %v1218_v34 = vmul.f32 %v2815_v49, %v2689_v20  ;;  %vm1543_vm13 = vmand %vm1537_vm11, %vm1540_vm12  ;;  %vm1573_vm15 = vcmp.lt.f32.partialorder %v2605_v4, 0.8 }
 0x25e   :  { %vm1542_vm8 = vmand %vm1536_vm4, %vm1539_vm5  ;;  %vm1471_vm5 = vcmp.ge.f32.partialorder %v2605_v4, 0.0 }
 0x25f   :  { %v1731_v48 = vsel %vm1542_vm8, 1.0, %v1998_v9  ;;  %vm1608_vm4 = vmand %vm1602_vm1, %vm1605_vm2  ;;  %vm1507_vm8 = vcmp.lt.f32.partialorder %v2605_v4, 0.4  ;;  %vm1603_vm1 = vcmp.ge.f32.partialorder %v2605_v4, 0.8  ;;  %vm1606_vm2 = vcmp.le.f32.partialorder %v2605_v4, 1.0 }
 0x260   :  { %v1557_v3 = vrot.slane %v1731_v48, %v2596_v42  ;;  %vm1477_vm9 = vmand %vm1471_vm5, %vm1474_vm6 }
 0x261   :  { %vm1510_vm10 = vmand %vm1504_vm7, %vm1507_vm8 }
 0x262   :  { %vm1576_vm0 = vmand %vm1570_vm14, %vm1573_vm15 }
 0x30c   :  { %v1305_v18 = vpop.f32.mrb[40].mxu1 }
 0x30d   :  { %v1306_v37 = vadd.f32 %v1305_v18, %v1208_v26  ;;  %v1307_v22 = vpop.f32.mrb[41].mxu1  ;;  %v1220_v18 = vmul.f32 %v2879_v62, %v2678_v14  ;;  %v1737_v14 = vsel %vm1608_vm4, 1.0, %v1998_v9 }
 0x30e   :  { %v1308_v33 = vadd.f32 %v1307_v22, %v1209_v51  ;;  %v1221_v51 = vmul.f32 %v2879_v62, %v2689_v20  ;;  %v1586_v22 = vrot.slane %v1733_v1, %v2596_v42 }
 0x30f   :  { %v1454_v40 = vadd.f32 %v2834_v27, %v1306_v37 }
 0x310   :  { %v1311_v24 = vpop.f32.mrb[42].mxu1  ;;  %v1455_v52 = vadd.f32 %v2834_v27, %v1308_v33  ;;  %v2917_v33 = vpop.permute.xlu0 %1446 }
 0x311   :  { %v1312_v30 = vadd.f32 %v1311_v24, %v1211_v23  ;;  %v1313_v28 = vpop.f32.mrb[43].mxu1  ;;  %v1496_v61 = vmul.f32 %v1487_v41, %v1454_v40 }
 0x312   :  { %v1314_v25 = vadd.f32 %v1313_v28, %v1212_v53  ;;  %v1497_v15 = vmul.f32 %v1491_v19, %v1455_v52  ;;  %v1590_v53 = vrot.slane %v1734_v46, %v2596_v42  ;;  %v1623_v52 = vrot.slane %v1737_v14, %v2596_v42 }
 0x313   :  { %v1457_v58 = vadd.f32 %v2851_v39, %v1312_v30 }
 0x314   :  { %v1458_v50 = vadd.f32 %v2851_v39, %v1314_v25  ;;  %v1317_v0 = vpop.f32.mrb[44].mxu1 }
 0x315   :  { %v1529_v29 = vmul.f32 %v1520_v47, %v1457_v58  ;;  %v1318_v55 = vadd.f32 %v1317_v0, %v1214_v32  ;;  %v1319_v63 = vpop.f32.mrb[45].mxu1  ;;  %v1736_v32 = vsel %vm2897_vm3, 1.0, %v1998_v9  ;;  %v2930_v47 = vpop.permute.xlu1 %1451  ;;  %vm1609_vm3 = vmand %vm1603_vm1, %vm1606_vm2 }
 0x316   :  { %v1530_v5 = vmul.f32 %v1524_v43, %v1458_v50  ;;  %v1320_v44 = vadd.f32 %v1319_v63, %v1215_v35  ;;  %v1619_v40 = vrot.slane %v1736_v32, %v2596_v42  ;;  %v1210_v43 = vmul.f32 %v2801_v17, %v2609_v54 }
 0x317   :  { %v1532_v16 = vadd.f32 %v1529_v29, %v1496_v61  ;;  %v1460_v31 = vadd.f32 %v2888_v2, %v1318_v55  ;;  %v1726_v61 = vsel %vm1477_vm9, 1.0, %v1998_v9  ;;  %v1729_v29 = vsel %vm1510_vm10, 1.0, %v1998_v9 }
 0x318   :  { %v1533_v6 = vadd.f32 %v1530_v5, %v1497_v15  ;;  %v1461_v13 = vadd.f32 %v2888_v2, %v1320_v44  ;;  %v1323_v26 = vpop.f32.mrb[46].mxu1  ;;  %v1213_v17 = vmul.f32 %v2803_v38, %v2609_v54  ;;  %v1495_v5 = vrot.slane %v1726_v61, %v2596_v42 }
 0x319   :  { %v1562_v37 = vmul.f32 %v1553_v59, %v1460_v31  ;;  %v1324_v21 = vadd.f32 %v1323_v26, %v1217_v12  ;;  %v1325_v23 = vpop.f32.mrb[47].mxu1  ;;  %v1528_v46 = vrot.slane %v1729_v29, %v2596_v42  ;;  %v1216_v31 = vmul.f32 %v2809_v7, %v2609_v54 }
 0x31a   :  { %v1563_v10 = vmul.f32 %v1557_v3, %v1461_v13  ;;  %v1326_v11 = vadd.f32 %v1325_v23, %v1218_v34  ;;  %v1219_v7 = vmul.f32 %v2815_v49, %v2609_v54  ;;  %v1222_v32 = vmul.f32 %v2879_v62, %v2609_v54 }
 0x31b   :  { %v1565_v35 = vadd.f32 %v1562_v37, %v1532_v16  ;;  %v1463_v20 = vadd.f32 %v2917_v33, %v1324_v21  ;;  %v1732_v16 = vsel %vm1543_vm13, 1.0, %v1998_v9 }
 0x31c   :  { %v1566_v8 = vadd.f32 %v1563_v10, %v1533_v6  ;;  %v1464_v36 = vadd.f32 %v2917_v33, %v1326_v11  ;;  %v1329_v41 = vpop.f32.mrb[48].mxu1  ;;  %v1561_v13 = vrot.slane %v1732_v16, %v2596_v42 }
 0x31d   :  { %v1595_v24 = vmul.f32 %v1586_v22, %v1463_v20  ;;  %v1330_v45 = vadd.f32 %v1329_v41, %v1220_v18  ;;  %v1331_v30 = vpop.f32.mrb[49].mxu1  ;;  %v1735_v18 = vsel %vm1576_vm0, 1.0, %v1998_v9 }
 0x31e   :  { %v1596_v28 = vmul.f32 %v1590_v53, %v1464_v36  ;;  %v1332_v48 = vadd.f32 %v1331_v30, %v1221_v51  ;;  %v1594_v4 = vrot.slane %v1735_v18, %v2596_v42  ;;  %v1738_v53 = vsel %vm1609_vm3, 1.0, %v1998_v9 }
 0x31f   :  { %v1598_v19 = vadd.f32 %v1595_v24, %v1565_v35  ;;  %v1466_v25 = vadd.f32 %v2930_v47, %v1330_v45  ;;  %v1627_v49 = vrot.slane %v1738_v53, %v2596_v42 }
 0x320   :  { %v1599_v56 = vadd.f32 %v1596_v28, %v1566_v8  ;;  %v1467_v58 = vadd.f32 %v2930_v47, %v1332_v48  ;;  %v1400_v59 = vpop.f32.mrb[50].mxu1 }
 0x321   :  { %v1628_v60 = vmul.f32 %v1619_v40, %v1466_v25  ;;  %v1401_v50 = vadd.f32 %v1400_v59, %v1210_v43  ;;  %v1832_v0 = vpop.f32.mrb[51].mxu1 }
 0x322   :  { %v1629_v3 = vmul.f32 %v1623_v52, %v1467_v58 }
 0x323   :  { %v1631_v55 = vadd.f32 %v1628_v60, %v1598_v19  ;;  %v1456_v15 = vadd.f32 %v2834_v27, %v1401_v50 }
 0x324   :  { %v1405_v63 = vpop.f32.mrb[52].mxu1  ;;  %v1632_v1 = vadd.f32 %v1629_v3, %v1599_v56 }
 0x325   :  { %v1406_v44 = vadd.f32 %v1405_v63, %v1213_v17  ;;  %v1835_v57 = vpop.f32.mrb[53].mxu1  ;;  %1634 = vst [vmem:[#allocation2] sm:$0xff] %v1631_v55  ;;  %v1498_v27 = vmul.f32 %v1495_v5, %v1456_v15 }
 0x326   :  { %1635 = vst [vmem:[#allocation2 + $0x8] sm:$0xff] %v1632_v1 }
 0x327   :  { %v1459_v38 = vadd.f32 %v2851_v39, %v1406_v44 }
 0x328   :  { %v1410_v12 = vpop.f32.mrb[54].mxu1 }
 0x329   :  { %v1531_v34 = vmul.f32 %v1528_v46, %v1459_v38  ;;  %v1411_v6 = vadd.f32 %v1410_v12, %v1216_v31  ;;  %v1838_v26 = vpop.f32.mrb[55].mxu1 }
 0x32b   :  { %v1534_v51 = vadd.f32 %v1531_v34, %v1498_v27  ;;  %v1462_v39 = vadd.f32 %v2888_v2, %v1411_v6 }
 0x32c   :  { %v1415_v37 = vpop.f32.mrb[56].mxu1 }
 0x32d   :  { %v1564_v21 = vmul.f32 %v1561_v13, %v1462_v39  ;;  %v1416_v22 = vadd.f32 %v1415_v37, %v1219_v7  ;;  %v1841_v23 = vpop.f32.mrb[57].mxu1 }
 0x32f   :  { %v1567_v10 = vadd.f32 %v1564_v21, %v1534_v51  ;;  %v1465_v11 = vadd.f32 %v2917_v33, %v1416_v22 }
 0x330   :  { %v1420_v14 = vpop.f32.mrb[58].mxu1 }
 0x331   :  { %v1597_v2 = vmul.f32 %v1594_v4, %v1465_v11  ;;  %v1421_v35 = vadd.f32 %v1420_v14, %v1222_v32  ;;  %v1844_v20 = vpop.f32.mrb[59].mxu1 }
 0x333   :  { %v1600_v8 = vadd.f32 %v1597_v2, %v1567_v10  ;;  %v1468_v36 = vadd.f32 %v2930_v47, %v1421_v35 }
 0x335   :  { %v1630_v41 = vmul.f32 %v1627_v49, %v1468_v36 }
 0x337   :  { %v1633_v24 = vadd.f32 %v1630_v41, %v1600_v8 }
 0x339   :  { %1636 = vst [vmem:[#allocation2 + $0x10] sm:$0xff] %v1633_v24 }
 0x33a   :  { %1984 = shalt.err (!%p1981_p4)
}
 0x33b   :  { %s1985_s4 = scalar_lea.hbm %s2989_s9, 384 }
 0x33c   :  { %p1986_p5 = scmp.ne.s32.totalorder %s2989_s9, %s1985_s4  ;;  %p1989_p6 = scmp.lt.u32.totalorder %s1985_s4, %s2989_s9 }
 0x33e   :  { %p1991_p7 = pnand %p1989_p6, %p1986_p5 }
 0x340   :  { %1994 = shalt.err (!%p1991_p7)
}
 0x341   :  { %1646 = dma.vmem_to_hbm [thread:$0]  %s1644_s7, 384, %s2989_s9, [#allocation3]  }
 0x342   :  { %1995 = dma.done.wait [#allocation3], 384  }
 0x343   :  { %1996 = vsyncadd [#allocation3], 4294966912 }
 0x344   :  { %1650 = vsyncpa [#allocation3], 1 }

</bundles_post_ra>
